<compile_context>
chip_gen: v6e
topology: v6e:2x2x1
jax: 0.10.0
libtpu: 0.0.40
codegen_flags: <defaults>
</compile_context>

<pallas_src>
import jax
import jax.numpy as jnp
from jax.experimental import pallas as pl
from jax.experimental.pallas import tpu as pltpu

_LANE = 128
_SUBLANE = 8


def _round_up(n, m):
    return ((n + m - 1) // m) * m


def lstm_fc_kernel(x_ref, wih_ref, b_ref, whh_ref, wfc_ref, bfc_ref,
                   out_ref, xw_sc):
    """x_ref: (T*Bp, Ip); wih_ref: (Ip, 4Hp); b_ref: (1, 4Hp);
    whh_ref: (Hp, 4Hp); wfc_ref: (Hp, Cp); bfc_ref: (1, Cp);
    out_ref: (Bp, Cp); xw_sc: (T*Bp, 4Hp) VMEM scratch."""
    hp = whh_ref.shape[0]
    bp = out_ref.shape[0]
    t_steps = x_ref.shape[0] // bp

    # One big, MXU-efficient input projection for ALL timesteps, with the fused
    # LSTM bias folded in (single broadcast, hoisted out of the recurrence).
    xw_sc[...] = (jnp.dot(x_ref[...], wih_ref[...],
                          preferred_element_type=jnp.float32)
                  + b_ref[...])

    # Load the recurrent weight once; reused across the unrolled loop.
    w_hh = whh_ref[...]

    def step(t, carry):
        h, c = carry
        row = pl.multiple_of(t * bp, _SUBLANE)
        gates = xw_sc[pl.ds(row, bp), :] + jnp.dot(
            h, w_hh, preferred_element_type=jnp.float32)        # (Bp, 4Hp)
        # Lane-aligned gate blocks (each is a multiple of 128 lanes).
        i_g = jax.nn.sigmoid(gates[:, 0:hp])
        f_g = jax.nn.sigmoid(gates[:, hp:2 * hp])
        g_g = jnp.tanh(gates[:, 2 * hp:3 * hp])
        o_g = jax.nn.sigmoid(gates[:, 3 * hp:4 * hp])
        c_new = f_g * c + i_g * g_g
        h_new = o_g * jnp.tanh(c_new)
        return h_new, c_new

    h0 = jnp.zeros((bp, hp), jnp.float32)
    c0 = jnp.zeros((bp, hp), jnp.float32)
    h_t, _ = jax.lax.fori_loop(0, t_steps, step, (h0, c0), unroll=True)

    # Final Linear head on h_T; lane-dense (Bp, Cp) store.
    out_ref[...] = (jnp.dot(h_t, wfc_ref[...],
                            preferred_element_type=jnp.float32)
                    + bfc_ref[...])


def text_model_forward(x_btI, params):
    """x_btI: (B, T, I) float32, like PyTorch batch_first input."""
    w_ih, w_hh, b_ih, b_hh, w_fc, b_fc = params
    B, T, I = x_btI.shape
    H = w_hh.shape[1]           # w_hh is (4H, H)
    C = w_fc.shape[0]           # w_fc is (C, H)

    Bp = _round_up(max(B, _SUBLANE), _SUBLANE)
    Ip = _round_up(I, _LANE)
    Hp = _round_up(H, _LANE)
    Cp = _round_up(C, _LANE)

    f32 = jnp.float32

    # --- Pad weights so each gate occupies its own 128-lane-aligned block. ---
    # W_ih^T -> (Ip, 4Hp): column block g*Hp:(g*Hp+H) holds gate g.
    wih_g = w_ih.reshape(4, H, I).astype(f32)
    wih_pad = jnp.zeros((4, Hp, Ip), f32).at[:, :H, :I].set(wih_g)
    wih_pad = wih_pad.transpose(2, 0, 1).reshape(Ip, 4 * Hp)

    # W_hh^T -> (Hp, 4Hp): rows >= H are zero so padded h lanes never leak.
    whh_g = w_hh.reshape(4, H, H).astype(f32)
    whh_pad = jnp.zeros((4, Hp, Hp), f32).at[:, :H, :H].set(whh_g)
    whh_pad = whh_pad.transpose(2, 0, 1).reshape(Hp, 4 * Hp)

    # Fused LSTM bias, gate-block aligned.
    b_g = (b_ih + b_hh).reshape(4, H).astype(f32)
    b_pad = jnp.zeros((4, Hp), f32).at[:, :H].set(b_g).reshape(1, 4 * Hp)

    # FC: W_fc^T -> (Hp, Cp); padded rows/cols are zero.
    wfc_pad = jnp.zeros((Hp, Cp), f32).at[:H, :C].set(w_fc.T.astype(f32))
    bfc_pad = jnp.zeros((1, Cp), f32).at[0, :C].set(b_fc.astype(f32))

    # --- Pad and flatten the input to time-major (T*Bp, Ip). ---
    x_tb = jnp.transpose(x_btI.astype(f32), (1, 0, 2))            # (T, B, I)
    x_pad = jnp.zeros((T, Bp, Ip), f32).at[:, :B, :I].set(x_tb)
    x_flat = x_pad.reshape(T * Bp, Ip)

    out_pad = pl.pallas_call(
        lstm_fc_kernel,
        out_shape=jax.ShapeDtypeStruct((Bp, Cp), f32),
        grid_spec=pltpu.PrefetchScalarGridSpec(
            num_scalar_prefetch=0,
            grid=(1,),                                   # single invocation;
            in_specs=[                                   # recurrence is in-kernel
                pl.BlockSpec((T * Bp, Ip), lambda i: (0, 0)),     # x (all steps)
                pl.BlockSpec((Ip, 4 * Hp), lambda i: (0, 0)),     # W_ih^T
                pl.BlockSpec((1, 4 * Hp), lambda i: (0, 0)),      # fused bias
                pl.BlockSpec((Hp, 4 * Hp), lambda i: (0, 0)),     # W_hh^T
                pl.BlockSpec((Hp, Cp), lambda i: (0, 0)),         # W_fc^T
                pl.BlockSpec((1, Cp), lambda i: (0, 0)),          # b_fc
            ],
            out_specs=pl.BlockSpec((Bp, Cp), lambda i: (0, 0)),
            scratch_shapes=[
                pltpu.VMEM((T * Bp, 4 * Hp), jnp.float32),        # xW slab
            ],
        ),
        compiler_params=pltpu.CompilerParams(
            dimension_semantics=("arbitrary",)),
    )(x_flat, wih_pad, b_pad, whh_pad, wfc_pad, bfc_pad)

    return out_pad[:B, :C]


def reference_forward(x_btI, params):
    """Pure-JAX reference matching torch.nn.LSTM + Linear semantics."""
    w_ih, w_hh, b_ih, b_hh, w_fc, b_fc = params
    B, T, I = x_btI.shape
    H = w_hh.shape[1]
    h = jnp.zeros((B, H), jnp.float32)
    c = jnp.zeros((B, H), jnp.float32)
    for t in range(T):
        gates = x_btI[:, t, :] @ w_ih.T + h @ w_hh.T + b_ih + b_hh
        i_g = jax.nn.sigmoid(gates[:, 0:H])
        f_g = jax.nn.sigmoid(gates[:, H:2 * H])
        g_g = jnp.tanh(gates[:, 2 * H:3 * H])
        o_g = jax.nn.sigmoid(gates[:, 3 * H:4 * H])
        c = f_g * c + i_g * g_g
        h = o_g * jnp.tanh(c)
    return h @ w_fc.T + b_fc


def init_params(key, input_size, hidden_size, num_classes):
    ks = jax.random.split(key, 6)
    k = 1.0 / jnp.sqrt(hidden_size)
    w_ih = jax.random.uniform(ks[0], (4 * hidden_size, input_size),
                              jnp.float32, -k, k)
    w_hh = jax.random.uniform(ks[1], (4 * hidden_size, hidden_size),
                              jnp.float32, -k, k)
    b_ih = jax.random.uniform(ks[2], (4 * hidden_size,), jnp.float32, -k, k)
    b_hh = jax.random.uniform(ks[3], (4 * hidden_size,), jnp.float32, -k, k)
    kf = 1.0 / jnp.sqrt(hidden_size)
    w_fc = jax.random.uniform(ks[4], (num_classes, hidden_size),
                              jnp.float32, -kf, kf)
    b_fc = jax.random.uniform(ks[5], (num_classes,), jnp.float32, -kf, kf)
    return (w_ih, w_hh, b_ih, b_hh, w_fc, b_fc)


if __name__ == "__main__":
    B, T, I, H, C = 2, 8, 16, 32, 4
    key = jax.random.PRNGKey(0)
    kx, kp = jax.random.split(key)
    x = jax.random.normal(kx, (B, T, I), jnp.float32)
    params = init_params(kp, I, H, C)

    out = text_model_forward(x, params)
    jax.block_until_ready(out)

    ref = reference_forward(x, params)
    assert out.shape == (B, C)
    assert jnp.allclose(out, ref, atol=1e-4, rtol=1e-4)
    print("KERNEL_OK")
</pallas_src>

<mosaic_0001>
module attributes {stable_mosaic.version = 11 : i64} {
  func.func @lstm_fc_kernel(%arg0: i32, %arg1: memref<64x128xf32, #tpu.memory_space<vmem>>, %arg2: memref<128x512xf32, #tpu.memory_space<vmem>>, %arg3: memref<1x512xf32, #tpu.memory_space<vmem>>, %arg4: memref<128x512xf32, #tpu.memory_space<vmem>>, %arg5: memref<128x128xf32, #tpu.memory_space<vmem>>, %arg6: memref<1x128xf32, #tpu.memory_space<vmem>>, %arg7: memref<8x128xf32, #tpu.memory_space<vmem>>, %arg8: memref<64x512xf32, #tpu.memory_space<vmem>>) attributes {dimension_semantics = [#tpu.dimension_semantics<arbitrary>], iteration_bounds = array<i64: 1>, scalar_prefetch = 0 : i64, scratch_operands = 1 : i64, tpu.core_type = #tpu.core_type<tc>, window_params = [{pipeline_mode = #tpu.pipeline_mode<synchronous>, transform_indices = @transform_0, window_bounds = array<i64: 64, 128>}, {pipeline_mode = #tpu.pipeline_mode<synchronous>, transform_indices = @transform_1, window_bounds = array<i64: 128, 512>}, {pipeline_mode = #tpu.pipeline_mode<synchronous>, transform_indices = @transform_2, window_bounds = array<i64: 1, 512>}, {pipeline_mode = #tpu.pipeline_mode<synchronous>, transform_indices = @transform_3, window_bounds = array<i64: 128, 512>}, {pipeline_mode = #tpu.pipeline_mode<synchronous>, transform_indices = @transform_4, window_bounds = array<i64: 128, 128>}, {pipeline_mode = #tpu.pipeline_mode<synchronous>, transform_indices = @transform_5, window_bounds = array<i64: 1, 128>}, {pipeline_mode = #tpu.pipeline_mode<synchronous>, transform_indices = @transform_6, window_bounds = array<i64: 8, 128>}]} {
    %c0 = arith.constant 0 : index
    %c0_0 = arith.constant 0 : index
    %0 = vector.load %arg1[%c0, %c0_0] : memref<64x128xf32, #tpu.memory_space<vmem>>, vector<64x128xf32>
    %c0_1 = arith.constant 0 : index
    %c0_2 = arith.constant 0 : index
    %1 = vector.load %arg2[%c0_1, %c0_2] : memref<128x512xf32, #tpu.memory_space<vmem>>, vector<128x512xf32>
    %cst = arith.constant dense<0.000000e+00> : vector<64x512xf32>
    %2 = tpu.matmul %0, %1, %cst {dimension_numbers = #tpu.dot_dimension_numbers<[1], [0], [0], [1], [0, 0, 1, 1], [], []>} : vector<64x128xf32>, vector<128x512xf32>, vector<64x512xf32> -> vector<64x512xf32>
    %c0_3 = arith.constant 0 : index
    %c0_4 = arith.constant 0 : index
    %3 = vector.load %arg3[%c0_3, %c0_4] : memref<1x512xf32, #tpu.memory_space<vmem>>, vector<1x512xf32>
    %4 = vector.broadcast %3 : vector<1x512xf32> to vector<64x512xf32>
    %5 = arith.addf %2, %4 : vector<64x512xf32>
    %c0_5 = arith.constant 0 : index
    %c0_6 = arith.constant 0 : index
    %6 = vector.load %arg8[%c0_5, %c0_6] : memref<64x512xf32, #tpu.memory_space<vmem>>, vector<64x512xf32>
    tpu.vector_store %arg8[%c0_5, %c0_6], %5 {strides = array<i32>} : memref<64x512xf32, #tpu.memory_space<vmem>>, vector<64x512xf32>,
    %c0_7 = arith.constant 0 : index
    %c0_8 = arith.constant 0 : index
    %7 = vector.load %arg4[%c0_7, %c0_8] : memref<128x512xf32, #tpu.memory_space<vmem>>, vector<128x512xf32>
    %cst_9 = arith.constant 0.000000e+00 : f32
    %8 = vector.broadcast %cst_9 : f32 to vector<8x128xf32>
    %cst_10 = arith.constant 0.000000e+00 : f32
    %9 = vector.broadcast %cst_10 : f32 to vector<8x128xf32>
    %c0_i32 = arith.constant 0 : i32
    %c8_i32 = arith.constant 8 : i32
    %10 = arith.muli %c0_i32, %c8_i32 : i32
    %11 = tpu.assume_multiple %10, 8 : i32
    %12 = arith.index_cast %11 : i32 to index
    %c0_11 = arith.constant 0 : index
    %13 = vector.load %arg8[%12, %c0_11] : memref<64x512xf32, #tpu.memory_space<vmem>>, vector<8x512xf32>
    %cst_12 = arith.constant dense<0.000000e+00> : vector<8x512xf32>
    %14 = tpu.matmul %8, %7, %cst_12 {dimension_numbers = #tpu.dot_dimension_numbers<[1], [0], [0], [1], [0, 0, 1, 1], [], []>} : vector<8x128xf32>, vector<128x512xf32>, vector<8x512xf32> -> vector<8x512xf32>
    %15 = arith.addf %13, %14 : vector<8x512xf32>
    %16 = vector.extract_strided_slice %15 {offsets = [0, 0], sizes = [8, 128], strides = [1, 1]} : vector<8x512xf32> to vector<8x128xf32>
    %17 = arith.negf %16 : vector<8x128xf32>
    %18 = math.exp %17 : vector<8x128xf32>
    %cst_13 = arith.constant 1.000000e+00 : f32
    %19 = vector.broadcast %cst_13 : f32 to vector<8x128xf32>
    %20 = arith.addf %19, %18 : vector<8x128xf32>
    %21 = arith.divf %19, %20 : vector<8x128xf32>
    %22 = vector.extract_strided_slice %15 {offsets = [0, 128], sizes = [8, 128], strides = [1, 1]} : vector<8x512xf32> to vector<8x128xf32>
    %23 = arith.negf %22 : vector<8x128xf32>
    %24 = math.exp %23 : vector<8x128xf32>
    %cst_14 = arith.constant 1.000000e+00 : f32
    %25 = vector.broadcast %cst_14 : f32 to vector<8x128xf32>
    %26 = arith.addf %25, %24 : vector<8x128xf32>
    %27 = arith.divf %25, %26 : vector<8x128xf32>
    %28 = vector.extract_strided_slice %15 {offsets = [0, 256], sizes = [8, 128], strides = [1, 1]} : vector<8x512xf32> to vector<8x128xf32>
    %29 = math.tanh %28 : vector<8x128xf32>
    %30 = vector.extract_strided_slice %15 {offsets = [0, 384], sizes = [8, 128], strides = [1, 1]} : vector<8x512xf32> to vector<8x128xf32>
    %31 = arith.negf %30 : vector<8x128xf32>
    %32 = math.exp %31 : vector<8x128xf32>
    %cst_15 = arith.constant 1.000000e+00 : f32
    %33 = vector.broadcast %cst_15 : f32 to vector<8x128xf32>
    %34 = arith.addf %33, %32 : vector<8x128xf32>
    %35 = arith.divf %33, %34 : vector<8x128xf32>
    %36 = arith.mulf %27, %9 : vector<8x128xf32>
    %37 = arith.mulf %21, %29 : vector<8x128xf32>
    %38 = arith.addf %36, %37 : vector<8x128xf32>
    %39 = math.tanh %38 : vector<8x128xf32>
    %40 = arith.mulf %35, %39 : vector<8x128xf32>
    %c1_i32 = arith.constant 1 : i32
    %c8_i32_16 = arith.constant 8 : i32
    %41 = arith.muli %c1_i32, %c8_i32_16 : i32
    %42 = tpu.assume_multiple %41, 8 : i32
    %43 = arith.index_cast %42 : i32 to index
    %c0_17 = arith.constant 0 : index
    %44 = vector.load %arg8[%43, %c0_17] : memref<64x512xf32, #tpu.memory_space<vmem>>, vector<8x512xf32>
    %cst_18 = arith.constant dense<0.000000e+00> : vector<8x512xf32>
    %45 = tpu.matmul %40, %7, %cst_18 {dimension_numbers = #tpu.dot_dimension_numbers<[1], [0], [0], [1], [0, 0, 1, 1], [], []>} : vector<8x128xf32>, vector<128x512xf32>, vector<8x512xf32> -> vector<8x512xf32>
    %46 = arith.addf %44, %45 : vector<8x512xf32>
    %47 = vector.extract_strided_slice %46 {offsets = [0, 0], sizes = [8, 128], strides = [1, 1]} : vector<8x512xf32> to vector<8x128xf32>
    %48 = arith.negf %47 : vector<8x128xf32>
    %49 = math.exp %48 : vector<8x128xf32>
    %cst_19 = arith.constant 1.000000e+00 : f32
    %50 = vector.broadcast %cst_19 : f32 to vector<8x128xf32>
    %51 = arith.addf %50, %49 : vector<8x128xf32>
    %52 = arith.divf %50, %51 : vector<8x128xf32>
    %53 = vector.extract_strided_slice %46 {offsets = [0, 128], sizes = [8, 128], strides = [1, 1]} : vector<8x512xf32> to vector<8x128xf32>
    %54 = arith.negf %53 : vector<8x128xf32>
    %55 = math.exp %54 : vector<8x128xf32>
    %cst_20 = arith.constant 1.000000e+00 : f32
    %56 = vector.broadcast %cst_20 : f32 to vector<8x128xf32>
    %57 = arith.addf %56, %55 : vector<8x128xf32>
    %58 = arith.divf %56, %57 : vector<8x128xf32>
    %59 = vector.extract_strided_slice %46 {offsets = [0, 256], sizes = [8, 128], strides = [1, 1]} : vector<8x512xf32> to vector<8x128xf32>
    %60 = math.tanh %59 : vector<8x128xf32>
    %61 = vector.extract_strided_slice %46 {offsets = [0, 384], sizes = [8, 128], strides = [1, 1]} : vector<8x512xf32> to vector<8x128xf32>
    %62 = arith.negf %61 : vector<8x128xf32>
    %63 = math.exp %62 : vector<8x128xf32>
    %cst_21 = arith.constant 1.000000e+00 : f32
    %64 = vector.broadcast %cst_21 : f32 to vector<8x128xf32>
    %65 = arith.addf %64, %63 : vector<8x128xf32>
    %66 = arith.divf %64, %65 : vector<8x128xf32>
    %67 = arith.mulf %58, %38 : vector<8x128xf32>
    %68 = arith.mulf %52, %60 : vector<8x128xf32>
    %69 = arith.addf %67, %68 : vector<8x128xf32>
    %70 = math.tanh %69 : vector<8x128xf32>
    %71 = arith.mulf %66, %70 : vector<8x128xf32>
    %c2_i32 = arith.constant 2 : i32
    %c8_i32_22 = arith.constant 8 : i32
    %72 = arith.muli %c2_i32, %c8_i32_22 : i32
    %73 = tpu.assume_multiple %72, 8 : i32
    %74 = arith.index_cast %73 : i32 to index
    %c0_23 = arith.constant 0 : index
    %75 = vector.load %arg8[%74, %c0_23] : memref<64x512xf32, #tpu.memory_space<vmem>>, vector<8x512xf32>
    %cst_24 = arith.constant dense<0.000000e+00> : vector<8x512xf32>
    %76 = tpu.matmul %71, %7, %cst_24 {dimension_numbers = #tpu.dot_dimension_numbers<[1], [0], [0], [1], [0, 0, 1, 1], [], []>} : vector<8x128xf32>, vector<128x512xf32>, vector<8x512xf32> -> vector<8x512xf32>
    %77 = arith.addf %75, %76 : vector<8x512xf32>
    %78 = vector.extract_strided_slice %77 {offsets = [0, 0], sizes = [8, 128], strides = [1, 1]} : vector<8x512xf32> to vector<8x128xf32>
    %79 = arith.negf %78 : vector<8x128xf32>
    %80 = math.exp %79 : vector<8x128xf32>
    %cst_25 = arith.constant 1.000000e+00 : f32
    %81 = vector.broadcast %cst_25 : f32 to vector<8x128xf32>
    %82 = arith.addf %81, %80 : vector<8x128xf32>
    %83 = arith.divf %81, %82 : vector<8x128xf32>
    %84 = vector.extract_strided_slice %77 {offsets = [0, 128], sizes = [8, 128], strides = [1, 1]} : vector<8x512xf32> to vector<8x128xf32>
    %85 = arith.negf %84 : vector<8x128xf32>
    %86 = math.exp %85 : vector<8x128xf32>
    %cst_26 = arith.constant 1.000000e+00 : f32
    %87 = vector.broadcast %cst_26 : f32 to vector<8x128xf32>
    %88 = arith.addf %87, %86 : vector<8x128xf32>
    %89 = arith.divf %87, %88 : vector<8x128xf32>
    %90 = vector.extract_strided_slice %77 {offsets = [0, 256], sizes = [8, 128], strides = [1, 1]} : vector<8x512xf32> to vector<8x128xf32>
    %91 = math.tanh %90 : vector<8x128xf32>
    %92 = vector.extract_strided_slice %77 {offsets = [0, 384], sizes = [8, 128], strides = [1, 1]} : vector<8x512xf32> to vector<8x128xf32>
    %93 = arith.negf %92 : vector<8x128xf32>
    %94 = math.exp %93 : vector<8x128xf32>
    %cst_27 = arith.constant 1.000000e+00 : f32
    %95 = vector.broadcast %cst_27 : f32 to vector<8x128xf32>
    %96 = arith.addf %95, %94 : vector<8x128xf32>
    %97 = arith.divf %95, %96 : vector<8x128xf32>
    %98 = arith.mulf %89, %69 : vector<8x128xf32>
    %99 = arith.mulf %83, %91 : vector<8x128xf32>
    %100 = arith.addf %98, %99 : vector<8x128xf32>
    %101 = math.tanh %100 : vector<8x128xf32>
    %102 = arith.mulf %97, %101 : vector<8x128xf32>
    %c3_i32 = arith.constant 3 : i32
    %c8_i32_28 = arith.constant 8 : i32
    %103 = arith.muli %c3_i32, %c8_i32_28 : i32
    %104 = tpu.assume_multiple %103, 8 : i32
    %105 = arith.index_cast %104 : i32 to index
    %c0_29 = arith.constant 0 : index
    %106 = vector.load %arg8[%105, %c0_29] : memref<64x512xf32, #tpu.memory_space<vmem>>, vector<8x512xf32>
    %cst_30 = arith.constant dense<0.000000e+00> : vector<8x512xf32>
    %107 = tpu.matmul %102, %7, %cst_30 {dimension_numbers = #tpu.dot_dimension_numbers<[1], [0], [0], [1], [0, 0, 1, 1], [], []>} : vector<8x128xf32>, vector<128x512xf32>, vector<8x512xf32> -> vector<8x512xf32>
    %108 = arith.addf %106, %107 : vector<8x512xf32>
    %109 = vector.extract_strided_slice %108 {offsets = [0, 0], sizes = [8, 128], strides = [1, 1]} : vector<8x512xf32> to vector<8x128xf32>
    %110 = arith.negf %109 : vector<8x128xf32>
    %111 = math.exp %110 : vector<8x128xf32>
    %cst_31 = arith.constant 1.000000e+00 : f32
    %112 = vector.broadcast %cst_31 : f32 to vector<8x128xf32>
    %113 = arith.addf %112, %111 : vector<8x128xf32>
    %114 = arith.divf %112, %113 : vector<8x128xf32>
    %115 = vector.extract_strided_slice %108 {offsets = [0, 128], sizes = [8, 128], strides = [1, 1]} : vector<8x512xf32> to vector<8x128xf32>
    %116 = arith.negf %115 : vector<8x128xf32>
    %117 = math.exp %116 : vector<8x128xf32>
    %cst_32 = arith.constant 1.000000e+00 : f32
    %118 = vector.broadcast %cst_32 : f32 to vector<8x128xf32>
    %119 = arith.addf %118, %117 : vector<8x128xf32>
    %120 = arith.divf %118, %119 : vector<8x128xf32>
    %121 = vector.extract_strided_slice %108 {offsets = [0, 256], sizes = [8, 128], strides = [1, 1]} : vector<8x512xf32> to vector<8x128xf32>
    %122 = math.tanh %121 : vector<8x128xf32>
    %123 = vector.extract_strided_slice %108 {offsets = [0, 384], sizes = [8, 128], strides = [1, 1]} : vector<8x512xf32> to vector<8x128xf32>
    %124 = arith.negf %123 : vector<8x128xf32>
    %125 = math.exp %124 : vector<8x128xf32>
    %cst_33 = arith.constant 1.000000e+00 : f32
    %126 = vector.broadcast %cst_33 : f32 to vector<8x128xf32>
    %127 = arith.addf %126, %125 : vector<8x128xf32>
    %128 = arith.divf %126, %127 : vector<8x128xf32>
    %129 = arith.mulf %120, %100 : vector<8x128xf32>
    %130 = arith.mulf %114, %122 : vector<8x128xf32>
    %131 = arith.addf %129, %130 : vector<8x128xf32>
    %132 = math.tanh %131 : vector<8x128xf32>
    %133 = arith.mulf %128, %132 : vector<8x128xf32>
    %c4_i32 = arith.constant 4 : i32
    %c8_i32_34 = arith.constant 8 : i32
    %134 = arith.muli %c4_i32, %c8_i32_34 : i32
    %135 = tpu.assume_multiple %134, 8 : i32
    %136 = arith.index_cast %135 : i32 to index
    %c0_35 = arith.constant 0 : index
    %137 = vector.load %arg8[%136, %c0_35] : memref<64x512xf32, #tpu.memory_space<vmem>>, vector<8x512xf32>
    %cst_36 = arith.constant dense<0.000000e+00> : vector<8x512xf32>
    %138 = tpu.matmul %133, %7, %cst_36 {dimension_numbers = #tpu.dot_dimension_numbers<[1], [0], [0], [1], [0, 0, 1, 1], [], []>} : vector<8x128xf32>, vector<128x512xf32>, vector<8x512xf32> -> vector<8x512xf32>
    %139 = arith.addf %137, %138 : vector<8x512xf32>
    %140 = vector.extract_strided_slice %139 {offsets = [0, 0], sizes = [8, 128], strides = [1, 1]} : vector<8x512xf32> to vector<8x128xf32>
    %141 = arith.negf %140 : vector<8x128xf32>
    %142 = math.exp %141 : vector<8x128xf32>
    %cst_37 = arith.constant 1.000000e+00 : f32
    %143 = vector.broadcast %cst_37 : f32 to vector<8x128xf32>
    %144 = arith.addf %143, %142 : vector<8x128xf32>
    %145 = arith.divf %143, %144 : vector<8x128xf32>
    %146 = vector.extract_strided_slice %139 {offsets = [0, 128], sizes = [8, 128], strides = [1, 1]} : vector<8x512xf32> to vector<8x128xf32>
    %147 = arith.negf %146 : vector<8x128xf32>
    %148 = math.exp %147 : vector<8x128xf32>
    %cst_38 = arith.constant 1.000000e+00 : f32
    %149 = vector.broadcast %cst_38 : f32 to vector<8x128xf32>
    %150 = arith.addf %149, %148 : vector<8x128xf32>
    %151 = arith.divf %149, %150 : vector<8x128xf32>
    %152 = vector.extract_strided_slice %139 {offsets = [0, 256], sizes = [8, 128], strides = [1, 1]} : vector<8x512xf32> to vector<8x128xf32>
    %153 = math.tanh %152 : vector<8x128xf32>
    %154 = vector.extract_strided_slice %139 {offsets = [0, 384], sizes = [8, 128], strides = [1, 1]} : vector<8x512xf32> to vector<8x128xf32>
    %155 = arith.negf %154 : vector<8x128xf32>
    %156 = math.exp %155 : vector<8x128xf32>
    %cst_39 = arith.constant 1.000000e+00 : f32
    %157 = vector.broadcast %cst_39 : f32 to vector<8x128xf32>
    %158 = arith.addf %157, %156 : vector<8x128xf32>
    %159 = arith.divf %157, %158 : vector<8x128xf32>
    %160 = arith.mulf %151, %131 : vector<8x128xf32>
    %161 = arith.mulf %145, %153 : vector<8x128xf32>
    %162 = arith.addf %160, %161 : vector<8x128xf32>
    %163 = math.tanh %162 : vector<8x128xf32>
    %164 = arith.mulf %159, %163 : vector<8x128xf32>
    %c5_i32 = arith.constant 5 : i32
    %c8_i32_40 = arith.constant 8 : i32
    %165 = arith.muli %c5_i32, %c8_i32_40 : i32
    %166 = tpu.assume_multiple %165, 8 : i32
    %167 = arith.index_cast %166 : i32 to index
    %c0_41 = arith.constant 0 : index
    %168 = vector.load %arg8[%167, %c0_41] : memref<64x512xf32, #tpu.memory_space<vmem>>, vector<8x512xf32>
    %cst_42 = arith.constant dense<0.000000e+00> : vector<8x512xf32>
    %169 = tpu.matmul %164, %7, %cst_42 {dimension_numbers = #tpu.dot_dimension_numbers<[1], [0], [0], [1], [0, 0, 1, 1], [], []>} : vector<8x128xf32>, vector<128x512xf32>, vector<8x512xf32> -> vector<8x512xf32>
    %170 = arith.addf %168, %169 : vector<8x512xf32>
    %171 = vector.extract_strided_slice %170 {offsets = [0, 0], sizes = [8, 128], strides = [1, 1]} : vector<8x512xf32> to vector<8x128xf32>
    %172 = arith.negf %171 : vector<8x128xf32>
    %173 = math.exp %172 : vector<8x128xf32>
    %cst_43 = arith.constant 1.000000e+00 : f32
    %174 = vector.broadcast %cst_43 : f32 to vector<8x128xf32>
    %175 = arith.addf %174, %173 : vector<8x128xf32>
    %176 = arith.divf %174, %175 : vector<8x128xf32>
    %177 = vector.extract_strided_slice %170 {offsets = [0, 128], sizes = [8, 128], strides = [1, 1]} : vector<8x512xf32> to vector<8x128xf32>
    %178 = arith.negf %177 : vector<8x128xf32>
    %179 = math.exp %178 : vector<8x128xf32>
    %cst_44 = arith.constant 1.000000e+00 : f32
    %180 = vector.broadcast %cst_44 : f32 to vector<8x128xf32>
    %181 = arith.addf %180, %179 : vector<8x128xf32>
    %182 = arith.divf %180, %181 : vector<8x128xf32>
    %183 = vector.extract_strided_slice %170 {offsets = [0, 256], sizes = [8, 128], strides = [1, 1]} : vector<8x512xf32> to vector<8x128xf32>
    %184 = math.tanh %183 : vector<8x128xf32>
    %185 = vector.extract_strided_slice %170 {offsets = [0, 384], sizes = [8, 128], strides = [1, 1]} : vector<8x512xf32> to vector<8x128xf32>
    %186 = arith.negf %185 : vector<8x128xf32>
    %187 = math.exp %186 : vector<8x128xf32>
    %cst_45 = arith.constant 1.000000e+00 : f32
    %188 = vector.broadcast %cst_45 : f32 to vector<8x128xf32>
    %189 = arith.addf %188, %187 : vector<8x128xf32>
    %190 = arith.divf %188, %189 : vector<8x128xf32>
    %191 = arith.mulf %182, %162 : vector<8x128xf32>
    %192 = arith.mulf %176, %184 : vector<8x128xf32>
    %193 = arith.addf %191, %192 : vector<8x128xf32>
    %194 = math.tanh %193 : vector<8x128xf32>
    %195 = arith.mulf %190, %194 : vector<8x128xf32>
    %c6_i32 = arith.constant 6 : i32
    %c8_i32_46 = arith.constant 8 : i32
    %196 = arith.muli %c6_i32, %c8_i32_46 : i32
    %197 = tpu.assume_multiple %196, 8 : i32
    %198 = arith.index_cast %197 : i32 to index
    %c0_47 = arith.constant 0 : index
    %199 = vector.load %arg8[%198, %c0_47] : memref<64x512xf32, #tpu.memory_space<vmem>>, vector<8x512xf32>
    %cst_48 = arith.constant dense<0.000000e+00> : vector<8x512xf32>
    %200 = tpu.matmul %195, %7, %cst_48 {dimension_numbers = #tpu.dot_dimension_numbers<[1], [0], [0], [1], [0, 0, 1, 1], [], []>} : vector<8x128xf32>, vector<128x512xf32>, vector<8x512xf32> -> vector<8x512xf32>
    %201 = arith.addf %199, %200 : vector<8x512xf32>
    %202 = vector.extract_strided_slice %201 {offsets = [0, 0], sizes = [8, 128], strides = [1, 1]} : vector<8x512xf32> to vector<8x128xf32>
    %203 = arith.negf %202 : vector<8x128xf32>
    %204 = math.exp %203 : vector<8x128xf32>
    %cst_49 = arith.constant 1.000000e+00 : f32
    %205 = vector.broadcast %cst_49 : f32 to vector<8x128xf32>
    %206 = arith.addf %205, %204 : vector<8x128xf32>
    %207 = arith.divf %205, %206 : vector<8x128xf32>
    %208 = vector.extract_strided_slice %201 {offsets = [0, 128], sizes = [8, 128], strides = [1, 1]} : vector<8x512xf32> to vector<8x128xf32>
    %209 = arith.negf %208 : vector<8x128xf32>
    %210 = math.exp %209 : vector<8x128xf32>
    %cst_50 = arith.constant 1.000000e+00 : f32
    %211 = vector.broadcast %cst_50 : f32 to vector<8x128xf32>
    %212 = arith.addf %211, %210 : vector<8x128xf32>
    %213 = arith.divf %211, %212 : vector<8x128xf32>
    %214 = vector.extract_strided_slice %201 {offsets = [0, 256], sizes = [8, 128], strides = [1, 1]} : vector<8x512xf32> to vector<8x128xf32>
    %215 = math.tanh %214 : vector<8x128xf32>
    %216 = vector.extract_strided_slice %201 {offsets = [0, 384], sizes = [8, 128], strides = [1, 1]} : vector<8x512xf32> to vector<8x128xf32>
    %217 = arith.negf %216 : vector<8x128xf32>
    %218 = math.exp %217 : vector<8x128xf32>
    %cst_51 = arith.constant 1.000000e+00 : f32
    %219 = vector.broadcast %cst_51 : f32 to vector<8x128xf32>
    %220 = arith.addf %219, %218 : vector<8x128xf32>
    %221 = arith.divf %219, %220 : vector<8x128xf32>
    %222 = arith.mulf %213, %193 : vector<8x128xf32>
    %223 = arith.mulf %207, %215 : vector<8x128xf32>
    %224 = arith.addf %222, %223 : vector<8x128xf32>
    %225 = math.tanh %224 : vector<8x128xf32>
    %226 = arith.mulf %221, %225 : vector<8x128xf32>
    %c7_i32 = arith.constant 7 : i32
    %c8_i32_52 = arith.constant 8 : i32
    %227 = arith.muli %c7_i32, %c8_i32_52 : i32
    %228 = tpu.assume_multiple %227, 8 : i32
    %229 = arith.index_cast %228 : i32 to index
    %c0_53 = arith.constant 0 : index
    %230 = vector.load %arg8[%229, %c0_53] : memref<64x512xf32, #tpu.memory_space<vmem>>, vector<8x512xf32>
    %cst_54 = arith.constant dense<0.000000e+00> : vector<8x512xf32>
    %231 = tpu.matmul %226, %7, %cst_54 {dimension_numbers = #tpu.dot_dimension_numbers<[1], [0], [0], [1], [0, 0, 1, 1], [], []>} : vector<8x128xf32>, vector<128x512xf32>, vector<8x512xf32> -> vector<8x512xf32>
    %232 = arith.addf %230, %231 : vector<8x512xf32>
    %233 = vector.extract_strided_slice %232 {offsets = [0, 0], sizes = [8, 128], strides = [1, 1]} : vector<8x512xf32> to vector<8x128xf32>
    %234 = arith.negf %233 : vector<8x128xf32>
    %235 = math.exp %234 : vector<8x128xf32>
    %cst_55 = arith.constant 1.000000e+00 : f32
    %236 = vector.broadcast %cst_55 : f32 to vector<8x128xf32>
    %237 = arith.addf %236, %235 : vector<8x128xf32>
    %238 = arith.divf %236, %237 : vector<8x128xf32>
    %239 = vector.extract_strided_slice %232 {offsets = [0, 128], sizes = [8, 128], strides = [1, 1]} : vector<8x512xf32> to vector<8x128xf32>
    %240 = arith.negf %239 : vector<8x128xf32>
    %241 = math.exp %240 : vector<8x128xf32>
    %cst_56 = arith.constant 1.000000e+00 : f32
    %242 = vector.broadcast %cst_56 : f32 to vector<8x128xf32>
    %243 = arith.addf %242, %241 : vector<8x128xf32>
    %244 = arith.divf %242, %243 : vector<8x128xf32>
    %245 = vector.extract_strided_slice %232 {offsets = [0, 256], sizes = [8, 128], strides = [1, 1]} : vector<8x512xf32> to vector<8x128xf32>
    %246 = math.tanh %245 : vector<8x128xf32>
    %247 = vector.extract_strided_slice %232 {offsets = [0, 384], sizes = [8, 128], strides = [1, 1]} : vector<8x512xf32> to vector<8x128xf32>
    %248 = arith.negf %247 : vector<8x128xf32>
    %249 = math.exp %248 : vector<8x128xf32>
    %cst_57 = arith.constant 1.000000e+00 : f32
    %250 = vector.broadcast %cst_57 : f32 to vector<8x128xf32>
    %251 = arith.addf %250, %249 : vector<8x128xf32>
    %252 = arith.divf %250, %251 : vector<8x128xf32>
    %253 = arith.mulf %244, %224 : vector<8x128xf32>
    %254 = arith.mulf %238, %246 : vector<8x128xf32>
    %255 = arith.addf %253, %254 : vector<8x128xf32>
    %256 = math.tanh %255 : vector<8x128xf32>
    %257 = arith.mulf %252, %256 : vector<8x128xf32>
    %c8_i32_58 = arith.constant 8 : i32
    %c0_59 = arith.constant 0 : index
    %c0_60 = arith.constant 0 : index
    %258 = vector.load %arg5[%c0_59, %c0_60] : memref<128x128xf32, #tpu.memory_space<vmem>>, vector<128x128xf32>
    %cst_61 = arith.constant dense<0.000000e+00> : vector<8x128xf32>
    %259 = tpu.matmul %257, %258, %cst_61 {dimension_numbers = #tpu.dot_dimension_numbers<[1], [0], [0], [1], [0, 0, 1, 1], [], []>} : vector<8x128xf32>, vector<128x128xf32>, vector<8x128xf32> -> vector<8x128xf32>
    %c0_62 = arith.constant 0 : index
    %c0_63 = arith.constant 0 : index
    %260 = vector.load %arg6[%c0_62, %c0_63] : memref<1x128xf32, #tpu.memory_space<vmem>>, vector<1x128xf32>
    %261 = vector.broadcast %260 : vector<1x128xf32> to vector<8x128xf32>
    %262 = arith.addf %259, %261 : vector<8x128xf32>
    %c0_64 = arith.constant 0 : index
    %c0_65 = arith.constant 0 : index
    %263 = vector.load %arg7[%c0_64, %c0_65] : memref<8x128xf32, #tpu.memory_space<vmem>>, vector<8x128xf32>
    tpu.vector_store %arg7[%c0_64, %c0_65], %262 {strides = array<i32>} : memref<8x128xf32, #tpu.memory_space<vmem>>, vector<8x128xf32>,
    return
  }
  func.func @transform_0(%arg0: i32) -> (i32, i32) {
    %c0_i32 = arith.constant 0 : i32
    %c0_i32_0 = arith.constant 0 : i32
    %c0_i32_1 = arith.constant 0 : i32
    return %c0_i32, %c0_i32_0 : i32, i32
  }
  func.func @transform_1(%arg0: i32) -> (i32, i32) {
    %c0_i32 = arith.constant 0 : i32
    %c0_i32_0 = arith.constant 0 : i32
    %c0_i32_1 = arith.constant 0 : i32
    return %c0_i32, %c0_i32_0 : i32, i32
  }
  func.func @transform_2(%arg0: i32) -> (i32, i32) {
    %c0_i32 = arith.constant 0 : i32
    %c0_i32_0 = arith.constant 0 : i32
    %c0_i32_1 = arith.constant 0 : i32
    return %c0_i32, %c0_i32_0 : i32, i32
  }
  func.func @transform_3(%arg0: i32) -> (i32, i32) {
    %c0_i32 = arith.constant 0 : i32
    %c0_i32_0 = arith.constant 0 : i32
    %c0_i32_1 = arith.constant 0 : i32
    return %c0_i32, %c0_i32_0 : i32, i32
  }
  func.func @transform_4(%arg0: i32) -> (i32, i32) {
    %c0_i32 = arith.constant 0 : i32
    %c0_i32_0 = arith.constant 0 : i32
    %c0_i32_1 = arith.constant 0 : i32
    return %c0_i32, %c0_i32_0 : i32, i32
  }
  func.func @transform_5(%arg0: i32) -> (i32, i32) {
    %c0_i32 = arith.constant 0 : i32
    %c0_i32_0 = arith.constant 0 : i32
    %c0_i32_1 = arith.constant 0 : i32
    return %c0_i32, %c0_i32_0 : i32, i32
  }
  func.func @transform_6(%arg0: i32) -> (i32, i32) {
    %c0_i32 = arith.constant 0 : i32
    %c0_i32_0 = arith.constant 0 : i32
    %c0_i32_1 = arith.constant 0 : i32
    return %c0_i32, %c0_i32_0 : i32, i32
  }
}

</mosaic_0001>

<bundles_post_ra>
// kernel: tpu_custom_call.1
= control target key start
LH: loop header
LB: loop body
LE: loop exit
PB: predicated region body
PF: predicated region fallthrough
CT: control target
= control target key end

     0   :  { %11 = vsyncpa [#allocation4], 0  ;;  %s3480_s0 = inlined_call_operand.hbm [shape: f32[64,128], index: 0, kind: input, shape index: {}]   ;;  %s3481_s1 = inlined_call_operand.hbm [shape: f32[128,512], index: 1, kind: input, shape index: {}]   ;;  %s3482_s2 = inlined_call_operand.hbm [shape: f32[1,512], index: 2, kind: input, shape index: {}]   ;;  %s3483_s3 = inlined_call_operand.hbm [shape: f32[128,512], index: 3, kind: input, shape index: {}]   ;;  %s3484_s4 = inlined_call_operand.hbm [shape: f32[128,128], index: 4, kind: input, shape index: {}]   ;;  %s3485_s5 = inlined_call_operand.vmem [shape: f32[1,128], index: 5, kind: input, shape index: {}]   ;;  %s3486_s6 = inlined_call_operand.hbm [shape: f32[8,128], index: 6, kind: output, shape index: {}]  }
   0x1   :  { %12 = vsyncpa [#allocation7], 0 }
   0x2   :  { %13 = vsyncpa [#allocation10], 0 }
   0x3   :  { %14 = vsyncpa [#allocation5], 0  ;;  %s2449_s21 = smov [#allocation6]  }
   0x4   :  { %s32_s22 = sshll.u32 %s2449_s21, 4  ;;  %s33_s22 = int_to_ptr.vmem [resolvable:$true] %s32_s22 }
   0x5   :  { %s2329_s23 = scalar_lea.vmem %s33_s22, 8192  ;;  %p2334_p1 = scmp.lt.s32.totalorder %s33_s22, %s33_s22 }
   0x6   :  { %p2330_p0 = scmp.ne.s32.totalorder %s33_s22, %s2329_s23  ;;  %p2335_p2 = scmp.lt.s32.totalorder %s2329_s23, %s2329_s23 }
   0x8   :  { %p2336_p3 = por %p2335_p2, %p2334_p1 }
   0xa   :  { %p2337_p4 = pnand %p2336_p3, %p2330_p0 }
   0xc   :  { %2340 = shalt.err (!%p2337_p4)
}
   0xd   :  { %s2450_s24 = smov 512   ;;  %s2451_s25 = smov 32  }
   0xe   :  { %38 = dma.hbm_to_vmem [thread:$0]  %s3481_s1, 8192, %s33_s22, [#allocation7], %s2450_s24, %s2450_s24, %s2451_s25  }
   0xf   :  { %s2452_s28 = smov [#allocation9]   ;;  %s2453_s30 = smov [#allocation3]  }
  0x10   :  { %s54_s29 = sshll.u32 %s2452_s28, 4  ;;  %s20_s7 = sshll.u32 %s2453_s30, 4  ;;  %s55_s29 = int_to_ptr.vmem [resolvable:$true] %s54_s29  ;;  %s21_s7 = int_to_ptr.vmem [resolvable:$true] %s20_s7 }
  0x11   :  { %s2349_s8 = scalar_lea.vmem %s55_s29, 8192  ;;  %p2354_p6 = scmp.lt.s32.totalorder %s55_s29, %s55_s29 }
  0x12   :  { %p2350_p5 = scmp.ne.s32.totalorder %s55_s29, %s2349_s8  ;;  %p2355_p7 = scmp.lt.s32.totalorder %s2349_s8, %s2349_s8 }
  0x14   :  { %p2356_p8 = por %p2355_p7, %p2354_p6 }
  0x16   :  { %p2357_p9 = pnand %p2356_p8, %p2350_p5 }
  0x18   :  { %2360 = shalt.err (!%p2357_p9)
}
  0x19   :  { %60 = dma.hbm_to_vmem [thread:$0]  %s3483_s3, 8192, %s55_s29, [#allocation10], %s2450_s24, %s2450_s24, %s2451_s25  }
  0x1a   :  { %s2369_s11 = scalar_lea.vmem %s21_s7, 1024  ;;  %p2374_p11 = scmp.lt.s32.totalorder %s21_s7, %s21_s7 }
  0x1b   :  { %p2370_p10 = scmp.ne.s32.totalorder %s21_s7, %s2369_s11  ;;  %p2375_p12 = scmp.lt.s32.totalorder %s2369_s11, %s2369_s11 }
  0x1d   :  { %p2376_p13 = por %p2375_p12, %p2374_p11 }
  0x1f   :  { %p2377_p0 = pnand %p2376_p13, %p2370_p10 }
  0x21   :  { %2380 = shalt.err (!%p2377_p0)
}
  0x22   :  { %s2454_s1 = smov 128   ;;  %s2455_s12 = smov 8  }
  0x23   :  { %26 = dma.hbm_to_vmem [thread:$0]  %s3480_s0, 1024, %s21_s7, [#allocation4], %s2454_s1, %s2454_s1, %s2455_s12  }
  0x24   :  { %s2456_s15 = smov [#allocation8]   ;;  %s2457_s17 = smov [#allocation11]  }
  0x25   :  { %s45_s16 = sshll.u32 %s2456_s15, 4  ;;  %s66_s18 = sshll.u32 %s2457_s17, 4  ;;  %s46_s16 = int_to_ptr.vmem [resolvable:$true] %s45_s16  ;;  %s67_s18 = int_to_ptr.vmem [resolvable:$true] %s66_s18 }
  0x26   :  { %s2389_s3 = scalar_lea.vmem %s46_s16, 64  ;;  %p2394_p2 = scmp.lt.s32.totalorder %s46_s16, %s46_s16 }
  0x27   :  { %p2390_p1 = scmp.ne.s32.totalorder %s46_s16, %s2389_s3  ;;  %p2395_p3 = scmp.lt.s32.totalorder %s2389_s3, %s2389_s3 }
  0x29   :  { %p2396_p4 = por %p2395_p3, %p2394_p2 }
  0x2b   :  { %p2397_p5 = pnand %p2396_p4, %p2390_p1 }
  0x2d   :  { %2400 = shalt.err (!%p2397_p5)
}
  0x2e   :  { %48 = dma.hbm_to_vmem [thread:$0]  %s3482_s2, 64, %s46_s16, [#allocation7]  }
  0x2f   :  { %s2409_s21 = scalar_lea.vmem %s67_s18, 2048  ;;  %p2414_p7 = scmp.lt.s32.totalorder %s67_s18, %s67_s18 }
  0x30   :  { %p2410_p6 = scmp.ne.s32.totalorder %s67_s18, %s2409_s21  ;;  %p2415_p8 = scmp.lt.s32.totalorder %s2409_s21, %s2409_s21 }
  0x32   :  { %p2416_p9 = por %p2415_p8, %p2414_p7 }
  0x34   :  { %p2417_p10 = pnand %p2416_p9, %p2410_p6 }
  0x36   :  { %2420 = shalt.err (!%p2417_p10)
}
  0x37   :  { %72 = dma.hbm_to_vmem [thread:$0]  %s3484_s4, 2048, %s67_s18, [#allocation10], %s2454_s1, %s2454_s1, %s2455_s12  }
  0x38   :  { %2441 = dma.done.wait [#allocation4], 1024  }
  0x39   :  { %2442 = vsyncadd [#allocation4], 4294966272 }
  0x3a   :  { %2443 = dma.done.wait [#allocation7], 8256  }
  0x3b   :  { %2444 = vsyncadd [#allocation7], 4294959040 }
  0x3c   :  { %2445 = dma.done.wait [#allocation10], 10240  }
  0x3d   :  { %2446 = vsyncadd [#allocation10], 4294957056  ;;  %v3487_v0 = vmov 0.0   ;;  %v159_v1 = vld [vmem:[#allocation6 + $0x1e8] sm:$0xff]  ;;  %v161_v2 = vld [vmem:[#allocation6 + $0x1f8] sm:$0xff]  ;;  %vm2459_vm0 = vmmov 0  }
  0x3e   :  { %248 = vmatprep.mubr.f32.mxu0 %v3487_v0  ;;  %361 = vmatprep.mubr.f32.mxu1 %v3487_v0  ;;  %v158_v3 = vld [vmem:[#allocation6 + $0x1e0] sm:$0xff]  ;;  %v160_v4 = vld [vmem:[#allocation6 + $0x1f0] sm:$0xff]  ;;  %v155_v5 = vld [vmem:[#allocation6 + $0x1c8] sm:$0xff]  ;;  %s2460_s23 = smov [#allocation12]  }
  0x3f   :  { %184 = vmatprep.subr.mxu0 %v159_v1  ;;  %297 = vmatprep.subr.mxu1 %v161_v2  ;;  %v157_v6 = vld [vmem:[#allocation6 + $0x1d8] sm:$0xff]  ;;  %v154_v7 = vld [vmem:[#allocation6 + $0x1c0] sm:$0xff]  ;;  %v156_v8 = vld [vmem:[#allocation6 + $0x1d0] sm:$0xff]  ;;  %s2022_s24 = sshll.u32 %s2460_s23, 4  ;;  %s2023_s24 = int_to_ptr.vmem [resolvable:$true] %s2022_s24 }
  0x40   :  { %185 = vmatpush1.msra.mxu0 %v158_v3  ;;  %298 = vmatpush1.msra.mxu1 %v160_v4  ;;  %v151_v9 = vld [vmem:[#allocation6 + $0x1a8] sm:$0xff]  ;;  %v153_v10 = vld [vmem:[#allocation6 + $0x1b8] sm:$0xff]  ;;  %v150_v11 = vld [vmem:[#allocation6 + $0x1a0] sm:$0xff]  ;;  %s2421_s25 = scalar_lea.vmem %s2023_s24, 128  ;;  %p2426_p12 = scmp.lt.s32.totalorder %s2023_s24, %s2023_s24 }
  0x41   :  { %186 = vmatprep.subr.mxu0 %v155_v5  ;;  %299 = vmatprep.subr.mxu1 %v157_v6  ;;  %v152_v12 = vld [vmem:[#allocation6 + $0x1b0] sm:$0xff]  ;;  %v147_v13 = vld [vmem:[#allocation6 + $0x188] sm:$0xff]  ;;  %v149_v14 = vld [vmem:[#allocation6 + $0x198] sm:$0xff]  ;;  %p2422_p11 = scmp.ne.s32.totalorder %s2023_s24, %s2421_s25  ;;  %p2427_p13 = scmp.lt.s32.totalorder %s2421_s25, %s2421_s25 }
  0x42   :  { %187 = vmatpush1.msra.mxu0 %v154_v7  ;;  %300 = vmatpush1.msra.mxu1 %v156_v8  ;;  %v146_v15 = vld [vmem:[#allocation6 + $0x180] sm:$0xff]  ;;  %v148_v16 = vld [vmem:[#allocation6 + $0x190] sm:$0xff]  ;;  %v143_v17 = vld [vmem:[#allocation6 + $0x168] sm:$0xff] }
  0x43   :  { %188 = vmatprep.subr.mxu0 %v151_v9  ;;  %301 = vmatprep.subr.mxu1 %v153_v10  ;;  %v145_v18 = vld [vmem:[#allocation6 + $0x178] sm:$0xff]  ;;  %v142_v19 = vld [vmem:[#allocation6 + $0x160] sm:$0xff]  ;;  %v144_v20 = vld [vmem:[#allocation6 + $0x170] sm:$0xff]  ;;  %p2428_p0 = por %p2427_p13, %p2426_p12 }
  0x44   :  { %189 = vmatpush1.msra.mxu0 %v150_v11  ;;  %302 = vmatpush1.msra.mxu1 %v152_v12  ;;  %v139_v21 = vld [vmem:[#allocation6 + $0x148] sm:$0xff]  ;;  %v141_v22 = vld [vmem:[#allocation6 + $0x158] sm:$0xff]  ;;  %v138_v23 = vld [vmem:[#allocation6 + $0x140] sm:$0xff] }
  0x45   :  { %190 = vmatprep.subr.mxu0 %v147_v13  ;;  %303 = vmatprep.subr.mxu1 %v149_v14  ;;  %v140_v24 = vld [vmem:[#allocation6 + $0x150] sm:$0xff]  ;;  %v135_v25 = vld [vmem:[#allocation6 + $0x128] sm:$0xff]  ;;  %v137_v26 = vld [vmem:[#allocation6 + $0x138] sm:$0xff]  ;;  %p2429_p1 = pnand %p2428_p0, %p2422_p11 }
  0x46   :  { %191 = vmatpush1.msra.mxu0 %v146_v15  ;;  %304 = vmatpush1.msra.mxu1 %v148_v16  ;;  %v134_v27 = vld [vmem:[#allocation6 + $0x120] sm:$0xff]  ;;  %v136_v28 = vld [vmem:[#allocation6 + $0x130] sm:$0xff]  ;;  %v131_v29 = vld [vmem:[#allocation6 + $0x108] sm:$0xff] }
  0x47   :  { %192 = vmatprep.subr.mxu0 %v143_v17  ;;  %305 = vmatprep.subr.mxu1 %v145_v18  ;;  %v133_v30 = vld [vmem:[#allocation6 + $0x118] sm:$0xff]  ;;  %v130_v31 = vld [vmem:[#allocation6 + $0x100] sm:$0xff]  ;;  %v132_v32 = vld [vmem:[#allocation6 + $0x110] sm:$0xff] }
  0x48   :  { %193 = vmatpush1.msra.mxu0 %v142_v19  ;;  %306 = vmatpush1.msra.mxu1 %v144_v20  ;;  %v127_v33 = vld [vmem:[#allocation6 + $0xe8] sm:$0xff]  ;;  %v129_v34 = vld [vmem:[#allocation6 + $0xf8] sm:$0xff]  ;;  %v126_v35 = vld [vmem:[#allocation6 + $0xe0] sm:$0xff] }
  0x49   :  { %194 = vmatprep.subr.mxu0 %v139_v21  ;;  %307 = vmatprep.subr.mxu1 %v141_v22  ;;  %v128_v36 = vld [vmem:[#allocation6 + $0xf0] sm:$0xff]  ;;  %v123_v37 = vld [vmem:[#allocation6 + $0xc8] sm:$0xff]  ;;  %v125_v38 = vld [vmem:[#allocation6 + $0xd8] sm:$0xff] }
  0x4a   :  { %195 = vmatpush1.msra.mxu0 %v138_v23  ;;  %308 = vmatpush1.msra.mxu1 %v140_v24  ;;  %v122_v39 = vld [vmem:[#allocation6 + $0xc0] sm:$0xff]  ;;  %v124_v40 = vld [vmem:[#allocation6 + $0xd0] sm:$0xff]  ;;  %v119_v41 = vld [vmem:[#allocation6 + $0xa8] sm:$0xff] }
  0x4b   :  { %196 = vmatprep.subr.mxu0 %v135_v25  ;;  %309 = vmatprep.subr.mxu1 %v137_v26  ;;  %v121_v42 = vld [vmem:[#allocation6 + $0xb8] sm:$0xff]  ;;  %v118_v43 = vld [vmem:[#allocation6 + $0xa0] sm:$0xff]  ;;  %v120_v44 = vld [vmem:[#allocation6 + $0xb0] sm:$0xff] }
  0x4c   :  { %197 = vmatpush1.msra.mxu0 %v134_v27  ;;  %310 = vmatpush1.msra.mxu1 %v136_v28  ;;  %v115_v45 = vld [vmem:[#allocation6 + $0x88] sm:$0xff]  ;;  %v117_v46 = vld [vmem:[#allocation6 + $0x98] sm:$0xff]  ;;  %v114_v47 = vld [vmem:[#allocation6 + $0x80] sm:$0xff] }
  0x4d   :  { %198 = vmatprep.subr.mxu0 %v131_v29  ;;  %311 = vmatprep.subr.mxu1 %v133_v30  ;;  %v116_v48 = vld [vmem:[#allocation6 + $0x90] sm:$0xff]  ;;  %v111_v49 = vld [vmem:[#allocation6 + $0x68] sm:$0xff]  ;;  %v113_v50 = vld [vmem:[#allocation6 + $0x78] sm:$0xff] }
  0x4e   :  { %199 = vmatpush1.msra.mxu0 %v130_v31  ;;  %312 = vmatpush1.msra.mxu1 %v132_v32  ;;  %v110_v51 = vld [vmem:[#allocation6 + $0x60] sm:$0xff]  ;;  %v112_v52 = vld [vmem:[#allocation6 + $0x70] sm:$0xff]  ;;  %v107_v53 = vld [vmem:[#allocation6 + $0x48] sm:$0xff] }
  0x4f   :  { %200 = vmatprep.subr.mxu0 %v127_v33  ;;  %313 = vmatprep.subr.mxu1 %v129_v34  ;;  %v109_v54 = vld [vmem:[#allocation6 + $0x58] sm:$0xff]  ;;  %v106_v55 = vld [vmem:[#allocation6 + $0x40] sm:$0xff]  ;;  %v108_v56 = vld [vmem:[#allocation6 + $0x50] sm:$0xff] }
  0x50   :  { %201 = vmatpush1.msra.mxu0 %v126_v35  ;;  %314 = vmatpush1.msra.mxu1 %v128_v36  ;;  %v103_v57 = vld [vmem:[#allocation6 + $0x28] sm:$0xff]  ;;  %v105_v58 = vld [vmem:[#allocation6 + $0x38] sm:$0xff]  ;;  %v102_v59 = vld [vmem:[#allocation6 + $0x20] sm:$0xff] }
  0x51   :  { %202 = vmatprep.subr.mxu0 %v123_v37  ;;  %315 = vmatprep.subr.mxu1 %v125_v38  ;;  %v104_v60 = vld [vmem:[#allocation6 + $0x30] sm:$0xff]  ;;  %v99_v61 = vld [vmem:[#allocation6 + $0x8] sm:$0xff]  ;;  %v101_v62 = vld [vmem:[#allocation6 + $0x18] sm:$0xff] }
  0x52   :  { %203 = vmatpush1.msra.mxu0 %v122_v39  ;;  %316 = vmatpush1.msra.mxu1 %v124_v40  ;;  %v98_v63 = vld [vmem:[#allocation6] sm:$0xff]  ;;  %v100_v1 = vld [vmem:[#allocation6 + $0x10] sm:$0xff]  ;;  %v91_v11 = vld [vmem:[#allocation3 + $0x8] sm:$0xff] }
  0x53   :  { %204 = vmatprep.subr.mxu0 %v119_v41  ;;  %317 = vmatprep.subr.mxu1 %v121_v42  ;;  %v90_v2 = vld [vmem:[#allocation3] sm:$0xff]  ;;  %v2513_v3 = vld [vmem:[#allocation9 + $0x1e8] sm:$0xff]  ;;  %v2519_v6 = vld [vmem:[#allocation9 + $0x1f0] sm:$0xff] }
  0x54   :  { %205 = vmatpush1.msra.mxu0 %v118_v43  ;;  %318 = vmatpush1.msra.mxu1 %v120_v44  ;;  %3575 = vst [vmem:[#allocation17_spill] sm:$0xff] %v2513_v3  ;;  %v2515_v4 = vld [vmem:[#allocation9 + $0x1f8] sm:$0xff]  ;;  %v2517_v5 = vld [vmem:[#allocation9 + $0x1e0] sm:$0xff]  ;;  %v2521_v7 = vld [vmem:[#allocation9 + $0x1c8] sm:$0xff] }
  0x55   :  { %206 = vmatprep.subr.mxu0 %v115_v45  ;;  %319 = vmatprep.subr.mxu1 %v117_v46  ;;  %3576 = vst [vmem:[#allocation18_spill] sm:$0xff] %v2515_v4  ;;  %v2523_v8 = vld [vmem:[#allocation9 + $0x1d8] sm:$0xff]  ;;  %v2529_v9 = vld [vmem:[#allocation9 + $0x1c0] sm:$0xff]  ;;  %v2531_v10 = vld [vmem:[#allocation9 + $0x1d0] sm:$0xff] }
  0x56   :  { %207 = vmatpush1.msra.mxu0 %v114_v47  ;;  %320 = vmatpush1.msra.mxu1 %v116_v48  ;;  %v2537_v12 = vld [vmem:[#allocation9 + $0x1a8] sm:$0xff]  ;;  %v2539_v13 = vld [vmem:[#allocation9 + $0x1b8] sm:$0xff]  ;;  %v2543_v14 = vld [vmem:[#allocation9 + $0x1a0] sm:$0xff] }
  0x57   :  { %208 = vmatprep.subr.mxu0 %v111_v49  ;;  %321 = vmatprep.subr.mxu1 %v113_v50  ;;  %v2545_v15 = vld [vmem:[#allocation9 + $0x1b0] sm:$0xff]  ;;  %v2547_v16 = vld [vmem:[#allocation9 + $0x188] sm:$0xff]  ;;  %v2549_v17 = vld [vmem:[#allocation9 + $0x198] sm:$0xff] }
  0x58   :  { %209 = vmatpush1.msra.mxu0 %v110_v51  ;;  %322 = vmatpush1.msra.mxu1 %v112_v52  ;;  %v2555_v18 = vld [vmem:[#allocation9 + $0x180] sm:$0xff]  ;;  %v2557_v19 = vld [vmem:[#allocation9 + $0x190] sm:$0xff]  ;;  %v2563_v21 = vld [vmem:[#allocation9 + $0x168] sm:$0xff] }
  0x59   :  { %210 = vmatprep.subr.mxu0 %v107_v53  ;;  %323 = vmatprep.subr.mxu1 %v109_v54  ;;  %v92_v20 = vld [vmem:[#allocation3 + $0x10] sm:$0xff]  ;;  %v2565_v22 = vld [vmem:[#allocation9 + $0x178] sm:$0xff]  ;;  %v2569_v23 = vld [vmem:[#allocation9 + $0x160] sm:$0xff] }
  0x5a   :  { %211 = vmatpush1.msra.mxu0 %v106_v55  ;;  %324 = vmatpush1.msra.mxu1 %v108_v56  ;;  %v2571_v24 = vld [vmem:[#allocation9 + $0x170] sm:$0xff]  ;;  %v2573_v25 = vld [vmem:[#allocation9 + $0x148] sm:$0xff]  ;;  %v2575_v26 = vld [vmem:[#allocation9 + $0x158] sm:$0xff] }
  0x5b   :  { %212 = vmatprep.subr.mxu0 %v103_v57  ;;  %325 = vmatprep.subr.mxu1 %v105_v58  ;;  %v2581_v27 = vld [vmem:[#allocation9 + $0x140] sm:$0xff]  ;;  %v2583_v28 = vld [vmem:[#allocation9 + $0x150] sm:$0xff]  ;;  %v2589_v30 = vld [vmem:[#allocation9 + $0x128] sm:$0xff] }
  0x5c   :  { %213 = vmatpush1.msra.mxu0 %v102_v59  ;;  %326 = vmatpush1.msra.mxu1 %v104_v60  ;;  %v93_v29 = vld [vmem:[#allocation3 + $0x18] sm:$0xff]  ;;  %v2595_v32 = vld [vmem:[#allocation9 + $0x120] sm:$0xff]  ;;  %v2599_v34 = vld [vmem:[#allocation9 + $0x108] sm:$0xff] }
  0x5d   :  { %214 = vmatprep.subr.mxu0 %v99_v61  ;;  %327 = vmatprep.subr.mxu1 %v101_v62  ;;  %v2591_v31 = vld [vmem:[#allocation9 + $0x138] sm:$0xff]  ;;  %v2597_v33 = vld [vmem:[#allocation9 + $0x130] sm:$0xff]  ;;  %v2607_v36 = vld [vmem:[#allocation9 + $0x100] sm:$0xff] }
  0x5e   :  { %215 = vmatpush1.msra.mxu0 %v98_v63  ;;  %328 = vmatpush1.msra.mxu1 %v100_v1  ;;  %v2601_v35 = vld [vmem:[#allocation9 + $0x118] sm:$0xff]  ;;  %v2609_v37 = vld [vmem:[#allocation9 + $0x110] sm:$0xff]  ;;  %v2615_v39 = vld [vmem:[#allocation9 + $0xe8] sm:$0xff] }
  0x5f   :  { %249 = vmatmul.mubr.f32.vlgmr.msra.gmra.mxu0 %v90_v2  ;;  %362 = vmatmul.mubr.f32.vlgmr.msra.gmra.mxu1 %v90_v2  ;;  %v94_v38 = vld [vmem:[#allocation3 + $0x20] sm:$0xff]  ;;  %v2623_v42 = vld [vmem:[#allocation9 + $0xf0] sm:$0xff]  ;;  %v2625_v43 = vld [vmem:[#allocation9 + $0xc8] sm:$0xff] }
  0x60   :  { %513 = vmatprep.subr.mxu0 %v2513_v3  ;;  %584 = vmatprep.subr.mxu1 %v2515_v4  ;;  %v2617_v40 = vld [vmem:[#allocation9 + $0xf8] sm:$0xff]  ;;  %v2621_v41 = vld [vmem:[#allocation9 + $0xe0] sm:$0xff]  ;;  %v2635_v46 = vld [vmem:[#allocation9 + $0xd0] sm:$0xff] }
  0x61   :  { %514 = vmatpush1.msra.mxu0 %v2517_v5  ;;  %585 = vmatpush1.msra.mxu1 %v2519_v6  ;;  %v2627_v44 = vld [vmem:[#allocation9 + $0xd8] sm:$0xff]  ;;  %v2633_v45 = vld [vmem:[#allocation9 + $0xc0] sm:$0xff]  ;;  %v2641_v48 = vld [vmem:[#allocation9 + $0xa8] sm:$0xff] }
  0x62   :  { %515 = vmatprep.subr.mxu0 %v2521_v7  ;;  %586 = vmatprep.subr.mxu1 %v2523_v8  ;;  %v95_v47 = vld [vmem:[#allocation3 + $0x28] sm:$0xff]  ;;  %v2643_v49 = vld [vmem:[#allocation9 + $0xb8] sm:$0xff]  ;;  %v2649_v51 = vld [vmem:[#allocation9 + $0xb0] sm:$0xff] }
  0x63   :  { %254 = vmatprep.mubr.f32.mxu0 %v3487_v0  ;;  %367 = vmatprep.mubr.f32.mxu1 %v3487_v0  ;;  %v2647_v50 = vld [vmem:[#allocation9 + $0xa0] sm:$0xff]  ;;  %v2651_v52 = vld [vmem:[#allocation9 + $0x88] sm:$0xff]  ;;  %v2653_v53 = vld [vmem:[#allocation9 + $0x98] sm:$0xff] }
  0x64   :  { %516 = vmatpush1.msra.mxu0 %v2529_v9  ;;  %587 = vmatpush1.msra.mxu1 %v2531_v10  ;;  %3577 = vst [vmem:[#allocation19_spill] sm:$0xff] %v2651_v52  ;;  %3578 = vst [vmem:[#allocation20_spill] sm:$0xff] %v2653_v53  ;;  %v2659_v54 = vld [vmem:[#allocation9 + $0x80] sm:$0xff]  ;;  %v2661_v55 = vld [vmem:[#allocation9 + $0x90] sm:$0xff] }
  0x65   :  { %255 = vmatmul.mubr.f32.gmra.mxu0 %v91_v11  ;;  %368 = vmatmul.mubr.f32.gmra.mxu1 %v91_v11  ;;  %3579 = vst [vmem:[#allocation21_spill] sm:$0xff] %v2659_v54  ;;  %3580 = vst [vmem:[#allocation22_spill] sm:$0xff] %v2661_v55  ;;  %v96_v56 = vld [vmem:[#allocation3 + $0x30] sm:$0xff]  ;;  %v2669_v58 = vld [vmem:[#allocation9 + $0x78] sm:$0xff] }
  0x66   :  { %517 = vmatprep.subr.mxu0 %v2537_v12  ;;  %588 = vmatprep.subr.mxu1 %v2539_v13  ;;  %v2667_v57 = vld [vmem:[#allocation9 + $0x68] sm:$0xff]  ;;  %3582 = vst [vmem:[#allocation24_spill] sm:$0xff] %v2669_v58  ;;  %v2673_v59 = vld [vmem:[#allocation9 + $0x60] sm:$0xff]  ;;  %v2675_v60 = vld [vmem:[#allocation9 + $0x70] sm:$0xff] }
  0x67   :  { %518 = vmatpush1.msra.mxu0 %v2543_v14  ;;  %589 = vmatpush1.msra.mxu1 %v2545_v15  ;;  %3581 = vst [vmem:[#allocation23_spill] sm:$0xff] %v2667_v57  ;;  %3583 = vst [vmem:[#allocation25_spill] sm:$0xff] %v2673_v59  ;;  %v2677_v61 = vld [vmem:[#allocation9 + $0x48] sm:$0xff]  ;;  %v2679_v62 = vld [vmem:[#allocation9 + $0x58] sm:$0xff] }
  0x68   :  { %519 = vmatprep.subr.mxu0 %v2547_v16  ;;  %590 = vmatprep.subr.mxu1 %v2549_v17  ;;  %3584 = vst [vmem:[#allocation26_spill] sm:$0xff] %v2675_v60  ;;  %3585 = vst [vmem:[#allocation27_spill] sm:$0xff] %v2677_v61  ;;  %v2685_v63 = vld [vmem:[#allocation9 + $0x40] sm:$0xff]  ;;  %v2687_v1 = vld [vmem:[#allocation9 + $0x50] sm:$0xff] }
  0x69   :  { %260 = vmatprep.mubr.f32.mxu0 %v3487_v0  ;;  %373 = vmatprep.mubr.f32.mxu1 %v3487_v0  ;;  %3586 = vst [vmem:[#allocation28_spill] sm:$0xff] %v2679_v62  ;;  %3587 = vst [vmem:[#allocation29_spill] sm:$0xff] %v2685_v63  ;;  %v97_v2 = vld [vmem:[#allocation3 + $0x38] sm:$0xff]  ;;  %v2693_v11 = vld [vmem:[#allocation9 + $0x28] sm:$0xff] }
  0x6a   :  { %520 = vmatpush1.msra.mxu0 %v2555_v18  ;;  %591 = vmatpush1.msra.mxu1 %v2557_v19  ;;  %3588 = vst [vmem:[#allocation30_spill] sm:$0xff] %v2687_v1  ;;  %3589 = vst [vmem:[#allocation31_spill] sm:$0xff] %v2693_v11 }
  0x6b   :  { %261 = vmatmul.mubr.f32.gmra.mxu0 %v92_v20  ;;  %374 = vmatmul.mubr.f32.gmra.mxu1 %v92_v20  ;;  %v2695_v20 = vld [vmem:[#allocation9 + $0x38] sm:$0xff] }
  0x6c   :  { %521 = vmatprep.subr.mxu0 %v2563_v21  ;;  %592 = vmatprep.subr.mxu1 %v2565_v22  ;;  %3590 = vst [vmem:[#allocation32_spill] sm:$0xff] %v2695_v20 }
  0x6d   :  { %522 = vmatpush1.msra.mxu0 %v2569_v23  ;;  %593 = vmatpush1.msra.mxu1 %v2571_v24 }
  0x6e   :  { %523 = vmatprep.subr.mxu0 %v2573_v25  ;;  %594 = vmatprep.subr.mxu1 %v2575_v26 }
  0x6f   :  { %266 = vmatprep.mubr.f32.mxu0 %v3487_v0  ;;  %379 = vmatprep.mubr.f32.mxu1 %v3487_v0 }
  0x70   :  { %524 = vmatpush1.msra.mxu0 %v2581_v27  ;;  %595 = vmatpush1.msra.mxu1 %v2583_v28 }
  0x71   :  { %267 = vmatmul.mubr.f32.gmra.mxu0 %v93_v29  ;;  %380 = vmatmul.mubr.f32.gmra.mxu1 %v93_v29  ;;  %v2699_v29 = vld [vmem:[#allocation9 + $0x20] sm:$0xff] }
  0x72   :  { %525 = vmatprep.subr.mxu0 %v2589_v30  ;;  %596 = vmatprep.subr.mxu1 %v2591_v31  ;;  %3591 = vst [vmem:[#allocation33_spill] sm:$0xff] %v2699_v29 }
  0x73   :  { %526 = vmatpush1.msra.mxu0 %v2595_v32  ;;  %597 = vmatpush1.msra.mxu1 %v2597_v33 }
  0x74   :  { %527 = vmatprep.subr.mxu0 %v2599_v34  ;;  %598 = vmatprep.subr.mxu1 %v2601_v35 }
  0x75   :  { %272 = vmatprep.mubr.f32.mxu0 %v3487_v0  ;;  %385 = vmatprep.mubr.f32.mxu1 %v3487_v0 }
  0x76   :  { %528 = vmatpush1.msra.mxu0 %v2607_v36  ;;  %599 = vmatpush1.msra.mxu1 %v2609_v37 }
  0x77   :  { %273 = vmatmul.mubr.f32.gmra.mxu0 %v94_v38  ;;  %386 = vmatmul.mubr.f32.gmra.mxu1 %v94_v38  ;;  %v2701_v38 = vld [vmem:[#allocation9 + $0x30] sm:$0xff] }
  0x78   :  { %529 = vmatprep.subr.mxu0 %v2615_v39  ;;  %600 = vmatprep.subr.mxu1 %v2617_v40  ;;  %3592 = vst [vmem:[#allocation34_spill] sm:$0xff] %v2701_v38 }
  0x79   :  { %530 = vmatpush1.msra.mxu0 %v2621_v41  ;;  %601 = vmatpush1.msra.mxu1 %v2623_v42 }
  0x7a   :  { %531 = vmatprep.subr.mxu0 %v2625_v43  ;;  %602 = vmatprep.subr.mxu1 %v2627_v44 }
  0x7b   :  { %278 = vmatprep.mubr.f32.mxu0 %v3487_v0  ;;  %391 = vmatprep.mubr.f32.mxu1 %v3487_v0 }
  0x7c   :  { %532 = vmatpush1.msra.mxu0 %v2633_v45  ;;  %603 = vmatpush1.msra.mxu1 %v2635_v46 }
  0x7d   :  { %279 = vmatmul.mubr.f32.gmra.mxu0 %v95_v47  ;;  %392 = vmatmul.mubr.f32.gmra.mxu1 %v95_v47  ;;  %v2703_v47 = vld [vmem:[#allocation9 + $0x8] sm:$0xff] }
  0x7e   :  { %533 = vmatprep.subr.mxu0 %v2641_v48  ;;  %604 = vmatprep.subr.mxu1 %v2643_v49  ;;  %3593 = vst [vmem:[#allocation35_spill] sm:$0xff] %v2703_v47 }
  0x7f   :  { %534 = vmatpush1.msra.mxu0 %v2647_v50  ;;  %605 = vmatpush1.msra.mxu1 %v2649_v51 }
  0x80   :  { %535 = vmatprep.subr.mxu0 %v2651_v52  ;;  %606 = vmatprep.subr.mxu1 %v2653_v53 }
  0x81   :  { %284 = vmatprep.mubr.f32.mxu0 %v3487_v0  ;;  %397 = vmatprep.mubr.f32.mxu1 %v3487_v0 }
  0x82   :  { %536 = vmatpush1.msra.mxu0 %v2659_v54  ;;  %607 = vmatpush1.msra.mxu1 %v2661_v55 }
  0x83   :  { %285 = vmatmul.mubr.f32.gmra.mxu0 %v96_v56  ;;  %398 = vmatmul.mubr.f32.gmra.mxu1 %v96_v56  ;;  %v2705_v56 = vld [vmem:[#allocation9 + $0x18] sm:$0xff] }
  0x84   :  { %537 = vmatprep.subr.mxu0 %v2667_v57  ;;  %608 = vmatprep.subr.mxu1 %v2669_v58  ;;  %3594 = vst [vmem:[#allocation36_spill] sm:$0xff] %v2705_v56 }
  0x85   :  { %538 = vmatpush1.msra.mxu0 %v2673_v59  ;;  %609 = vmatpush1.msra.mxu1 %v2675_v60 }
  0x86   :  { %539 = vmatprep.subr.mxu0 %v2677_v61  ;;  %610 = vmatprep.subr.mxu1 %v2679_v62 }
  0x87   :  { %290 = vmatprep.mubr.f32.mxu0 %v3487_v0  ;;  %403 = vmatprep.mubr.f32.mxu1 %v3487_v0  ;;  %v2709_v0 = vld [vmem:[#allocation9] sm:$0xff] }
  0x88   :  { %540 = vmatpush1.msra.mxu0 %v2685_v63  ;;  %611 = vmatpush1.msra.mxu1 %v2687_v1  ;;  %3595 = vst [vmem:[#allocation37_spill] sm:$0xff] %v2709_v0  ;;  %v2713_v1 = vld [vmem:[#allocation9 + $0x10] sm:$0xff] }
  0x89   :  { %291 = vmatmul.mubr.f32.gmra.mxu0 %v97_v2  ;;  %404 = vmatmul.mubr.f32.gmra.mxu1 %v97_v2  ;;  %3596 = vst [vmem:[#allocation38_spill] sm:$0xff] %v2713_v1  ;;  %v3597_v2 = vmov 0.0  }
  0x8a   :  { %541 = vmatprep.subr.mxu0 %v2693_v11  ;;  %612 = vmatprep.subr.mxu1 %v2695_v20 }
  0x8b   :  { %542 = vmatpush1.msra.mxu0 %v2699_v29  ;;  %613 = vmatpush1.msra.mxu1 %v2701_v38 }
  0x8c   :  { %543 = vmatprep.subr.mxu0 %v2703_v47  ;;  %614 = vmatprep.subr.mxu1 %v2705_v56 }
  0x8d   :  { %544 = vmatpush1.msra.mxu0 %v2709_v0  ;;  %577 = vmatprep.mubr.f32.mxu0 %v3597_v2 }
  0x8e   :  { %615 = vmatpush1.msra.mxu1 %v2713_v1  ;;  %648 = vmatprep.mubr.f32.mxu1 %v3597_v2 }
  0x8f   :  { %578 = vmatmul.mubr.f32.vlgmr.msra.gmra.mxu0 %v3597_v2  ;;  %649 = vmatmul.mubr.f32.vlgmr.msra.gmra.mxu1 %v3597_v2 }
  0x90   :  { %690 = vmatprep.subr.mxu0 %v2513_v3  ;;  %761 = vmatprep.subr.mxu1 %v2515_v4 }
  0x91   :  { %691 = vmatpush1.msra.mxu0 %v2517_v5  ;;  %762 = vmatpush1.msra.mxu1 %v2519_v6 }
  0x92   :  { %692 = vmatprep.subr.mxu0 %v2521_v7  ;;  %763 = vmatprep.subr.mxu1 %v2523_v8 }
  0x93   :  { %693 = vmatpush1.msra.mxu0 %v2529_v9  ;;  %764 = vmatpush1.msra.mxu1 %v2531_v10 }
  0x94   :  { %694 = vmatprep.subr.mxu0 %v2537_v12  ;;  %765 = vmatprep.subr.mxu1 %v2539_v13 }
  0x95   :  { %695 = vmatpush1.msra.mxu0 %v2543_v14  ;;  %766 = vmatpush1.msra.mxu1 %v2545_v15 }
  0x96   :  { %696 = vmatprep.subr.mxu0 %v2547_v16  ;;  %767 = vmatprep.subr.mxu1 %v2549_v17 }
  0x97   :  { %697 = vmatpush1.msra.mxu0 %v2555_v18  ;;  %768 = vmatpush1.msra.mxu1 %v2557_v19 }
  0x98   :  { %698 = vmatprep.subr.mxu0 %v2563_v21  ;;  %769 = vmatprep.subr.mxu1 %v2565_v22 }
  0x99   :  { %699 = vmatpush1.msra.mxu0 %v2569_v23  ;;  %770 = vmatpush1.msra.mxu1 %v2571_v24 }
  0x9a   :  { %700 = vmatprep.subr.mxu0 %v2573_v25  ;;  %771 = vmatprep.subr.mxu1 %v2575_v26 }
  0x9b   :  { %701 = vmatpush1.msra.mxu0 %v2581_v27  ;;  %772 = vmatpush1.msra.mxu1 %v2583_v28 }
  0x9c   :  { %702 = vmatprep.subr.mxu0 %v2589_v30  ;;  %773 = vmatprep.subr.mxu1 %v2591_v31 }
  0x9d   :  { %703 = vmatpush1.msra.mxu0 %v2595_v32  ;;  %774 = vmatpush1.msra.mxu1 %v2597_v33 }
  0x9e   :  { %704 = vmatprep.subr.mxu0 %v2599_v34  ;;  %775 = vmatprep.subr.mxu1 %v2601_v35 }
  0x9f   :  { %705 = vmatpush1.msra.mxu0 %v2607_v36  ;;  %776 = vmatpush1.msra.mxu1 %v2609_v37 }
  0xa0   :  { %706 = vmatprep.subr.mxu0 %v2615_v39  ;;  %777 = vmatprep.subr.mxu1 %v2617_v40 }
  0xa1   :  { %707 = vmatpush1.msra.mxu0 %v2621_v41  ;;  %778 = vmatpush1.msra.mxu1 %v2623_v42 }
  0xa2   :  { %708 = vmatprep.subr.mxu0 %v2625_v43  ;;  %779 = vmatprep.subr.mxu1 %v2627_v44 }
  0xa3   :  { %709 = vmatpush1.msra.mxu0 %v2633_v45  ;;  %780 = vmatpush1.msra.mxu1 %v2635_v46 }
  0xa4   :  { %710 = vmatprep.subr.mxu0 %v2641_v48  ;;  %781 = vmatprep.subr.mxu1 %v2643_v49 }
  0xa5   :  { %711 = vmatpush1.msra.mxu0 %v2647_v50  ;;  %782 = vmatpush1.msra.mxu1 %v2649_v51 }
  0xa6   :  { %712 = vmatprep.subr.mxu0 %v2651_v52  ;;  %783 = vmatprep.subr.mxu1 %v2653_v53  ;;  %v3598_v52 = vld [vmem:[#allocation30_spill] sm:$0xff] }
  0xa7   :  { %713 = vmatpush1.msra.mxu0 %v2659_v54  ;;  %784 = vmatpush1.msra.mxu1 %v2661_v55 }
  0xa8   :  { %714 = vmatprep.subr.mxu0 %v2667_v57  ;;  %785 = vmatprep.subr.mxu1 %v2669_v58 }
  0xa9   :  { %715 = vmatpush1.msra.mxu0 %v2673_v59  ;;  %786 = vmatpush1.msra.mxu1 %v2675_v60 }
  0xaa   :  { %716 = vmatprep.subr.mxu0 %v2677_v61  ;;  %787 = vmatprep.subr.mxu1 %v2679_v62 }
  0xab   :  { %717 = vmatpush1.msra.mxu0 %v2685_v63  ;;  %788 = vmatpush1.msra.mxu1 %v3598_v52  ;;  %v162_v52 = vld [vmem:[#allocation8] sm:$0xf] }
  0xac   :  { %718 = vmatprep.subr.mxu0 %v2693_v11  ;;  %789 = vmatprep.subr.mxu1 %v2695_v20  ;;  %v164_v20 = vlaneseq }
  0xad   :  { %719 = vmatpush1.msra.mxu0 %v2699_v29  ;;  %790 = vmatpush1.msra.mxu1 %v2701_v38 }
  0xae   :  { %720 = vmatprep.subr.mxu0 %v2703_v47  ;;  %791 = vmatprep.subr.mxu1 %v2705_v56  ;;  %v165_v29 = vshrl.u32 %v164_v20, 7 }
  0xaf   :  { %721 = vmatpush1.msra.mxu0 %v2709_v0  ;;  %754 = vmatprep.mubr.f32.mxu0 %v3597_v2 }
  0xb0   :  { %792 = vmatpush1.msra.mxu1 %v2713_v1  ;;  %825 = vmatprep.mubr.f32.mxu1 %v3597_v2  ;;  %v166_v47 = vsub.s32 0, %v165_v29  ;;  %v174_v56 = vsub.s32 2, %v165_v29  ;;  %v170_v1 = vsub.s32 1, %v165_v29  ;;  %v178_v62 = vsub.s32 3, %v165_v29 }
  0xb1   :  { %867 = vmatprep.subr.mxu0 %v2513_v3  ;;  %938 = vmatprep.subr.mxu1 %v2515_v4 }
  0xb2   :  { %v167_v2 = vrot.slane %v162_v52, %v166_v47  ;;  %v2799_v61 = vrot.slane %v162_v52, %v174_v56  ;;  %v171_v60 = vrot.slane %v162_v52, %v170_v1  ;;  %v2801_v20 = vrot.slane %v162_v52, %v178_v62 }
 0x11f   :  { %v2791_v11 = vpop.f32.mrf.mxu0  ;;  %v2793_v38 = vpop.f32.mrf.mxu1 }
 0x121   :  { %v2795_v0 = vpop.f32.mrf.mxu0  ;;  %v2797_v63 = vpop.f32.mrf.mxu1 }
 0x125   :  { %v256_v3 = vpop.f32.mrf.mxu0  ;;  %v369_v4 = vpop.f32.mrf.mxu1 }
 0x126   :  { %v2803_v59 = vadd.f32 %v256_v3, %v167_v2  ;;  %v2806_v58 = vadd.f32 %v369_v4, %v2799_v61 }
 0x127   :  { %v258_v57 = vpop.f32.mrf.mxu0  ;;  %v371_v55 = vpop.f32.mrf.mxu1 }
 0x128   :  { %3599 = vst [vmem:[#allocation39_spill] sm:$0xff] %v2803_v59  ;;  %3600 = vst [vmem:[#allocation40_spill] sm:$0xff] %v2806_v58  ;;  %v2808_v54 = vadd.f32 %v258_v57, %v171_v60  ;;  %v2811_v53 = vadd.f32 %v371_v55, %v2801_v20 }
 0x12a   :  { %3601 = vst [vmem:[#allocation41_spill] sm:$0xff] %v2808_v54  ;;  %3602 = vst [vmem:[#allocation42_spill] sm:$0xff] %v2811_v53 }
 0x12b   :  { %v262_v29 = vpop.f32.mrf.mxu0  ;;  %v375_v47 = vpop.f32.mrf.mxu1 }
 0x12c   :  { %v2813_v56 = vadd.f32 %v262_v29, %v167_v2  ;;  %v2816_v1 = vadd.f32 %v375_v47, %v2799_v61 }
 0x12d   :  { %v264_v52 = vpop.f32.mrf.mxu0  ;;  %v377_v3 = vpop.f32.mrf.mxu1 }
 0x12e   :  { %3603 = vst [vmem:[#allocation43_spill] sm:$0xff] %v2813_v56  ;;  %3604 = vst [vmem:[#allocation44_spill] sm:$0xff] %v2816_v1  ;;  %v2818_v62 = vadd.f32 %v264_v52, %v171_v60  ;;  %v2821_v4 = vadd.f32 %v377_v3, %v2801_v20 }
 0x130   :  { %3605 = vst [vmem:[#allocation45_spill] sm:$0xff] %v2818_v62  ;;  %3606 = vst [vmem:[#allocation46_spill] sm:$0xff] %v2821_v4 }
 0x131   :  { %v268_v58 = vpop.f32.mrf.mxu0  ;;  %v381_v57 = vpop.f32.mrf.mxu1 }
 0x132   :  { %v2823_v54 = vadd.f32 %v268_v58, %v167_v2  ;;  %v2826_v55 = vadd.f32 %v381_v57, %v2799_v61 }
 0x133   :  { %v270_v53 = vpop.f32.mrf.mxu0  ;;  %v383_v29 = vpop.f32.mrf.mxu1 }
 0x134   :  { %3607 = vst [vmem:[#allocation47_spill] sm:$0xff] %v2823_v54  ;;  %3608 = vst [vmem:[#allocation48_spill] sm:$0xff] %v2826_v55  ;;  %v2828_v56 = vadd.f32 %v270_v53, %v171_v60  ;;  %v2831_v47 = vadd.f32 %v383_v29, %v2801_v20 }
 0x136   :  { %3609 = vst [vmem:[#allocation49_spill] sm:$0xff] %v2828_v56  ;;  %3610 = vst [vmem:[#allocation50_spill] sm:$0xff] %v2831_v47 }
 0x137   :  { %v274_v1 = vpop.f32.mrf.mxu0  ;;  %v387_v52 = vpop.f32.mrf.mxu1 }
 0x138   :  { %v2833_v62 = vadd.f32 %v274_v1, %v167_v2  ;;  %v2836_v3 = vadd.f32 %v387_v52, %v2799_v61 }
 0x139   :  { %v276_v4 = vpop.f32.mrf.mxu0  ;;  %v389_v58 = vpop.f32.mrf.mxu1 }
 0x13a   :  { %3611 = vst [vmem:[#allocation51_spill] sm:$0xff] %v2833_v62  ;;  %3612 = vst [vmem:[#allocation52_spill] sm:$0xff] %v2836_v3  ;;  %v2838_v54 = vadd.f32 %v276_v4, %v171_v60  ;;  %v2841_v57 = vadd.f32 %v389_v58, %v2801_v20 }
 0x13c   :  { %3613 = vst [vmem:[#allocation53_spill] sm:$0xff] %v2838_v54  ;;  %3614 = vst [vmem:[#allocation54_spill] sm:$0xff] %v2841_v57 }
 0x13d   :  { %v280_v55 = vpop.f32.mrf.mxu0  ;;  %v393_v53 = vpop.f32.mrf.mxu1 }
 0x13e   :  { %v2843_v56 = vadd.f32 %v280_v55, %v167_v2  ;;  %v2846_v29 = vadd.f32 %v393_v53, %v2799_v61 }
 0x13f   :  { %v282_v47 = vpop.f32.mrf.mxu0  ;;  %v395_v1 = vpop.f32.mrf.mxu1 }
 0x140   :  { %3615 = vst [vmem:[#allocation55_spill] sm:$0xff] %v2843_v56  ;;  %3616 = vst [vmem:[#allocation56_spill] sm:$0xff] %v2846_v29  ;;  %v2848_v62 = vadd.f32 %v282_v47, %v171_v60  ;;  %v2851_v52 = vadd.f32 %v395_v1, %v2801_v20 }
 0x142   :  { %3617 = vst [vmem:[#allocation57_spill] sm:$0xff] %v2848_v62  ;;  %3618 = vst [vmem:[#allocation58_spill] sm:$0xff] %v2851_v52 }
 0x143   :  { %v286_v3 = vpop.f32.mrf.mxu0  ;;  %v399_v4 = vpop.f32.mrf.mxu1 }
 0x144   :  { %v2853_v54 = vadd.f32 %v286_v3, %v167_v2  ;;  %v2856_v58 = vadd.f32 %v399_v4, %v2799_v61 }
 0x145   :  { %v288_v57 = vpop.f32.mrf.mxu0  ;;  %v401_v55 = vpop.f32.mrf.mxu1 }
 0x146   :  { %3619 = vst [vmem:[#allocation59_spill] sm:$0xff] %v2853_v54  ;;  %3620 = vst [vmem:[#allocation60_spill] sm:$0xff] %v2856_v58  ;;  %v2858_v56 = vadd.f32 %v288_v57, %v171_v60  ;;  %v2861_v53 = vadd.f32 %v401_v55, %v2801_v20  ;;  %v251_v57 = vadd.f32 %v2791_v11, %v167_v2 }
 0x147   :  { %v253_v55 = vadd.f32 %v2795_v0, %v171_v60 }
 0x148   :  { %3621 = vst [vmem:[#allocation61_spill] sm:$0xff] %v2858_v56  ;;  %3622 = vst [vmem:[#allocation62_spill] sm:$0xff] %v2861_v53 }
 0x149   :  { %v292_v29 = vpop.f32.mrf.mxu0  ;;  %v405_v47 = vpop.f32.mrf.mxu1 }
 0x14a   :  { %v2863_v62 = vadd.f32 %v292_v29, %v167_v2  ;;  %v2866_v1 = vadd.f32 %v405_v47, %v2799_v61 }
 0x14b   :  { %v294_v52 = vpop.f32.mrf.mxu0  ;;  %v407_v3 = vpop.f32.mrf.mxu1 }
 0x14c   :  { %3623 = vst [vmem:[#allocation63_spill] sm:$0xff] %v2863_v62  ;;  %3624 = vst [vmem:[#allocation64_spill] sm:$0xff] %v2866_v1  ;;  %v2868_v54 = vadd.f32 %v294_v52, %v171_v60  ;;  %v2871_v4 = vadd.f32 %v407_v3, %v2801_v20  ;;  %v366_v52 = vadd.f32 %v2797_v63, %v2801_v20 }
 0x14d   :  { %v364_v3 = vadd.f32 %v2793_v38, %v2799_v61 }
 0x14e   :  { %3625 = vst [vmem:[#allocation65_spill] sm:$0xff] %v2868_v54  ;;  %3626 = vst [vmem:[#allocation66_spill] sm:$0xff] %v2871_v4 }
 0x14f   :  { %v579_v58 = vpop.f32.mrf.mxu0  ;;  %v650_v62 = vpop.f32.mrf.mxu1 }
 0x150   :  { %v655_v53 = vadd.f32 %v579_v58, %v251_v57  ;;  %v657_v4 = vadd.f32 %v650_v62, %v364_v3  ;;  %v3627_v62 = vld [vmem:[#allocation19_spill] sm:$0xff]  ;;  %v3632_v3 = vld [vmem:[#allocation24_spill] sm:$0xff] }
 0x151   :  { %v581_v56 = vpop.f32.mrf.mxu0  ;;  %v652_v1 = vpop.f32.mrf.mxu1 }
 0x152   :  { %v2040_v59 = vmul.f32 -1.442695, %v655_v53  ;;  %v656_v29 = vadd.f32 %v581_v56, %v253_v55  ;;  %v658_v54 = vadd.f32 %v652_v1, %v366_v52  ;;  %v3631_v52 = vld [vmem:[#allocation23_spill] sm:$0xff] }
 0x154   :  { %2129 = vpow2.f32 %v2040_v59  ;;  %v2041_v47 = vmul.f32 -1.442695, %v656_v29  ;;  %v2042_v11 = vmul.f32 -1.442695, %v658_v54  ;;  %v3629_v29 = vld [vmem:[#allocation21_spill] sm:$0xff] }
 0x156   :  { %2131 = vpow2.f32 %v2041_v47  ;;  %v3630_v47 = vld [vmem:[#allocation22_spill] sm:$0xff] }
 0x157   :  { %2133 = vpow2.f32 %v2042_v11  ;;  %v3633_v11 = vld [vmem:[#allocation25_spill] sm:$0xff] }
 0x161   :  { %v2130_v2 = vpop.eup %2129 }
 0x162   :  { %v662_v0 = vadd.f32 1.0, %v2130_v2  ;;  %v3634_v2 = vld [vmem:[#allocation26_spill] sm:$0xff] }
 0x163   :  { %v2132_v60 = vpop.eup %2131 }
 0x164   :  { %2135 = vrcp.f32 %v662_v0  ;;  %v668_v56 = vadd.f32 1.0, %v2132_v60  ;;  %v2134_v59 = vpop.eup %2133  ;;  %v3635_v0 = vld [vmem:[#allocation27_spill] sm:$0xff]  ;;  %v3636_v60 = vld [vmem:[#allocation28_spill] sm:$0xff] }
 0x165   :  { %2137 = vtanh.f32 %v657_v4  ;;  %v675_v55 = vadd.f32 1.0, %v2134_v59  ;;  %v3628_v4 = vld [vmem:[#allocation20_spill] sm:$0xff]  ;;  %v3638_v59 = vld [vmem:[#allocation30_spill] sm:$0xff] }
 0x166   :  { %2139 = vrcp.f32 %v668_v56  ;;  %v3637_v56 = vld [vmem:[#allocation29_spill] sm:$0xff] }
 0x167   :  { %2141 = vrcp.f32 %v675_v55  ;;  %v3642_v55 = vld [vmem:[#allocation34_spill] sm:$0xff] }
 0x171   :  { %v2136_v58 = vpop.eup %2135 }
 0x172   :  { %v2138_v53 = vpop.eup %2137 }
 0x173   :  { %v2140_v57 = vpop.eup %2139  ;;  %v679_v20 = vmul.f32 %v2138_v53, %v2136_v58  ;;  %v3639_v58 = vld [vmem:[#allocation31_spill] sm:$0xff]  ;;  %v3640_v53 = vld [vmem:[#allocation32_spill] sm:$0xff] }
 0x174   :  { %v678_v63 = vmul.f32 0.0, %v2140_v57  ;;  %v2142_v54 = vpop.eup %2141  ;;  %v3641_v57 = vld [vmem:[#allocation33_spill] sm:$0xff] }
 0x176   :  { %v2879_v1 = vadd.f32 %v679_v20, %v678_v63  ;;  %v3643_v63 = vld [vmem:[#allocation35_spill] sm:$0xff]  ;;  %v3644_v20 = vld [vmem:[#allocation36_spill] sm:$0xff] }
 0x178   :  { %2143 = vtanh.f32 %v2879_v1 }
 0x185   :  { %v2144_v61 = vpop.eup %2143 }
 0x186   :  { %v682_v38 = vmul.f32 %v2144_v61, %v2142_v54  ;;  %v3645_v54 = vld [vmem:[#allocation37_spill] sm:$0xff]  ;;  %v3646_v61 = vmov 0.0  }
 0x188   :  { %755 = vmatmul.mubr.f32.vlgmr.msra.gmra.mxu0 %v682_v38  ;;  %826 = vmatmul.mubr.f32.vlgmr.msra.gmra.mxu1 %v682_v38  ;;  %v3647_v38 = vld [vmem:[#allocation38_spill] sm:$0xff] }
 0x189   :  { %868 = vmatpush1.msra.mxu0 %v2517_v5  ;;  %939 = vmatpush1.msra.mxu1 %v2519_v6 }
 0x18a   :  { %869 = vmatprep.subr.mxu0 %v2521_v7  ;;  %940 = vmatprep.subr.mxu1 %v2523_v8 }
 0x18b   :  { %870 = vmatpush1.msra.mxu0 %v2529_v9  ;;  %941 = vmatpush1.msra.mxu1 %v2531_v10 }
 0x18c   :  { %871 = vmatprep.subr.mxu0 %v2537_v12  ;;  %942 = vmatprep.subr.mxu1 %v2539_v13 }
 0x18d   :  { %872 = vmatpush1.msra.mxu0 %v2543_v14  ;;  %943 = vmatpush1.msra.mxu1 %v2545_v15 }
 0x18e   :  { %873 = vmatprep.subr.mxu0 %v2547_v16  ;;  %944 = vmatprep.subr.mxu1 %v2549_v17 }
 0x18f   :  { %874 = vmatpush1.msra.mxu0 %v2555_v18  ;;  %945 = vmatpush1.msra.mxu1 %v2557_v19 }
 0x190   :  { %875 = vmatprep.subr.mxu0 %v2563_v21  ;;  %946 = vmatprep.subr.mxu1 %v2565_v22 }
 0x191   :  { %876 = vmatpush1.msra.mxu0 %v2569_v23  ;;  %947 = vmatpush1.msra.mxu1 %v2571_v24 }
 0x192   :  { %877 = vmatprep.subr.mxu0 %v2573_v25  ;;  %948 = vmatprep.subr.mxu1 %v2575_v26 }
 0x193   :  { %878 = vmatpush1.msra.mxu0 %v2581_v27  ;;  %949 = vmatpush1.msra.mxu1 %v2583_v28 }
 0x194   :  { %879 = vmatprep.subr.mxu0 %v2589_v30  ;;  %950 = vmatprep.subr.mxu1 %v2591_v31 }
 0x195   :  { %880 = vmatpush1.msra.mxu0 %v2595_v32  ;;  %951 = vmatpush1.msra.mxu1 %v2597_v33 }
 0x196   :  { %881 = vmatprep.subr.mxu0 %v2599_v34  ;;  %952 = vmatprep.subr.mxu1 %v2601_v35 }
 0x197   :  { %882 = vmatpush1.msra.mxu0 %v2607_v36  ;;  %953 = vmatpush1.msra.mxu1 %v2609_v37 }
 0x198   :  { %883 = vmatprep.subr.mxu0 %v2615_v39  ;;  %954 = vmatprep.subr.mxu1 %v2617_v40 }
 0x199   :  { %884 = vmatpush1.msra.mxu0 %v2621_v41  ;;  %955 = vmatpush1.msra.mxu1 %v2623_v42 }
 0x19a   :  { %885 = vmatprep.subr.mxu0 %v2625_v43  ;;  %956 = vmatprep.subr.mxu1 %v2627_v44 }
 0x19b   :  { %886 = vmatpush1.msra.mxu0 %v2633_v45  ;;  %957 = vmatpush1.msra.mxu1 %v2635_v46 }
 0x19c   :  { %887 = vmatprep.subr.mxu0 %v2641_v48  ;;  %958 = vmatprep.subr.mxu1 %v2643_v49 }
 0x19d   :  { %888 = vmatpush1.msra.mxu0 %v2647_v50  ;;  %959 = vmatpush1.msra.mxu1 %v2649_v51 }
 0x19e   :  { %889 = vmatprep.subr.mxu0 %v3627_v62  ;;  %960 = vmatprep.subr.mxu1 %v3628_v4 }
 0x19f   :  { %890 = vmatpush1.msra.mxu0 %v3629_v29  ;;  %961 = vmatpush1.msra.mxu1 %v3630_v47 }
 0x1a0   :  { %891 = vmatprep.subr.mxu0 %v3631_v52  ;;  %962 = vmatprep.subr.mxu1 %v3632_v3  ;;  %v3653_v3 = vld [vmem:[#allocation40_spill] sm:$0xff] }
 0x1a1   :  { %892 = vmatpush1.msra.mxu0 %v3633_v11  ;;  %963 = vmatpush1.msra.mxu1 %v3634_v2  ;;  %v3652_v11 = vld [vmem:[#allocation42_spill] sm:$0xff] }
 0x1a2   :  { %893 = vmatprep.subr.mxu0 %v3635_v0  ;;  %964 = vmatprep.subr.mxu1 %v3636_v60 }
 0x1a3   :  { %894 = vmatpush1.msra.mxu0 %v3637_v56  ;;  %965 = vmatpush1.msra.mxu1 %v3638_v59  ;;  %v3648_v59 = vld [vmem:[#allocation17_spill] sm:$0xff] }
 0x1a4   :  { %895 = vmatprep.subr.mxu0 %v3639_v58  ;;  %966 = vmatprep.subr.mxu1 %v3640_v53  ;;  %v3649_v58 = vld [vmem:[#allocation18_spill] sm:$0xff] }
 0x1a5   :  { %896 = vmatpush1.msra.mxu0 %v3641_v57  ;;  %967 = vmatpush1.msra.mxu1 %v3642_v55  ;;  %v3650_v57 = vld [vmem:[#allocation39_spill] sm:$0xff] }
 0x1a6   :  { %897 = vmatprep.subr.mxu0 %v3643_v63  ;;  %968 = vmatprep.subr.mxu1 %v3644_v20  ;;  %v3651_v63 = vld [vmem:[#allocation41_spill] sm:$0xff] }
 0x1a7   :  { %898 = vmatpush1.msra.mxu0 %v3645_v54  ;;  %931 = vmatprep.mubr.f32.mxu0 %v3646_v61 }
 0x1a8   :  { %969 = vmatpush1.msra.mxu1 %v3647_v38  ;;  %1002 = vmatprep.mubr.f32.mxu1 %v3646_v61 }
 0x1a9   :  { %1044 = vmatprep.subr.mxu0 %v3648_v59  ;;  %1115 = vmatprep.subr.mxu1 %v3649_v58 }
 0x248   :  { %v756_v53 = vpop.f32.mrf.mxu0  ;;  %v827_v20 = vpop.f32.mrf.mxu1 }
 0x249   :  { %v832_v56 = vadd.f32 %v756_v53, %v3650_v57  ;;  %v834_v61 = vadd.f32 %v827_v20, %v3653_v3 }
 0x24a   :  { %v758_v55 = vpop.f32.mrf.mxu0  ;;  %v829_v2 = vpop.f32.mrf.mxu1 }
 0x24b   :  { %v2043_v60 = vmul.f32 -1.442695, %v832_v56  ;;  %v833_v0 = vadd.f32 %v758_v55, %v3651_v63  ;;  %v835_v38 = vadd.f32 %v829_v2, %v3652_v11 }
 0x24d   :  { %2145 = vpow2.f32 %v2043_v60  ;;  %v2044_v54 = vmul.f32 -1.442695, %v833_v0  ;;  %v2045_v52 = vmul.f32 -1.442695, %v835_v38 }
 0x24f   :  { %2147 = vpow2.f32 %v2044_v54 }
 0x250   :  { %2149 = vtanh.f32 %v834_v61 }
 0x251   :  { %2151 = vpow2.f32 %v2045_v52 }
 0x25a   :  { %v2146_v59 = vpop.eup %2145 }
 0x25b   :  { %v839_v47 = vadd.f32 1.0, %v2146_v59 }
 0x25c   :  { %v2148_v58 = vpop.eup %2147 }
 0x25d   :  { %2153 = vrcp.f32 %v839_v47  ;;  %v845_v53 = vadd.f32 1.0, %v2148_v58  ;;  %v2150_v56 = vpop.eup %2149  ;;  %v3675_v47 = vld [vmem:[#allocation45_spill] sm:$0xff]  ;;  %v3676_v58 = vld [vmem:[#allocation46_spill] sm:$0xff] }
 0x25e   :  { %v2152_v57 = vpop.eup %2151 }
 0x25f   :  { %2155 = vrcp.f32 %v845_v53  ;;  %v852_v63 = vadd.f32 1.0, %v2152_v57 }
 0x261   :  { %2157 = vrcp.f32 %v852_v63 }
 0x26a   :  { %v2154_v60 = vpop.eup %2153 }
 0x26b   :  { %v856_v55 = vmul.f32 %v2154_v60, %v2150_v56  ;;  %v3677_v56 = vld [vmem:[#allocation44_spill] sm:$0xff] }
 0x26c   :  { %v2156_v0 = vpop.eup %2155 }
 0x26d   :  { %v855_v54 = vmul.f32 %v2156_v0, %v2879_v1 }
 0x26e   :  { %v2158_v3 = vpop.eup %2157 }
 0x26f   :  { %v2953_v11 = vadd.f32 %v856_v55, %v855_v54 }
 0x271   :  { %2159 = vtanh.f32 %v2953_v11 }
 0x27e   :  { %v2160_v2 = vpop.eup %2159 }
 0x27f   :  { %v859_v20 = vmul.f32 %v2160_v2, %v2158_v3 }
 0x281   :  { %932 = vmatmul.mubr.f32.vlgmr.msra.gmra.mxu0 %v859_v20  ;;  %1003 = vmatmul.mubr.f32.vlgmr.msra.gmra.mxu1 %v859_v20 }
 0x282   :  { %1045 = vmatpush1.msra.mxu0 %v2517_v5  ;;  %1116 = vmatpush1.msra.mxu1 %v2519_v6  ;;  %v3654_v5 = vld [vmem:[#allocation22_spill] sm:$0xff]  ;;  %v3655_v6 = vld [vmem:[#allocation23_spill] sm:$0xff] }
 0x283   :  { %1046 = vmatprep.subr.mxu0 %v2521_v7  ;;  %1117 = vmatprep.subr.mxu1 %v2523_v8  ;;  %v3656_v7 = vld [vmem:[#allocation24_spill] sm:$0xff]  ;;  %v3657_v8 = vld [vmem:[#allocation25_spill] sm:$0xff] }
 0x284   :  { %1047 = vmatpush1.msra.mxu0 %v2529_v9  ;;  %1118 = vmatpush1.msra.mxu1 %v2531_v10  ;;  %v3658_v9 = vld [vmem:[#allocation26_spill] sm:$0xff]  ;;  %v3659_v10 = vld [vmem:[#allocation27_spill] sm:$0xff] }
 0x285   :  { %1048 = vmatprep.subr.mxu0 %v2537_v12  ;;  %1119 = vmatprep.subr.mxu1 %v2539_v13  ;;  %v3660_v12 = vld [vmem:[#allocation28_spill] sm:$0xff]  ;;  %v3661_v13 = vld [vmem:[#allocation29_spill] sm:$0xff] }
 0x286   :  { %1049 = vmatpush1.msra.mxu0 %v2543_v14  ;;  %1120 = vmatpush1.msra.mxu1 %v2545_v15  ;;  %v3662_v14 = vld [vmem:[#allocation30_spill] sm:$0xff]  ;;  %v3663_v15 = vld [vmem:[#allocation31_spill] sm:$0xff] }
 0x287   :  { %1050 = vmatprep.subr.mxu0 %v2547_v16  ;;  %1121 = vmatprep.subr.mxu1 %v2549_v17  ;;  %v3664_v16 = vld [vmem:[#allocation32_spill] sm:$0xff]  ;;  %v3665_v17 = vld [vmem:[#allocation33_spill] sm:$0xff] }
 0x288   :  { %1051 = vmatpush1.msra.mxu0 %v2555_v18  ;;  %1122 = vmatpush1.msra.mxu1 %v2557_v19  ;;  %v3666_v18 = vld [vmem:[#allocation34_spill] sm:$0xff]  ;;  %v3667_v19 = vld [vmem:[#allocation35_spill] sm:$0xff] }
 0x289   :  { %1052 = vmatprep.subr.mxu0 %v2563_v21  ;;  %1123 = vmatprep.subr.mxu1 %v2565_v22  ;;  %v3668_v21 = vld [vmem:[#allocation36_spill] sm:$0xff]  ;;  %v3669_v22 = vld [vmem:[#allocation37_spill] sm:$0xff] }
 0x28a   :  { %1053 = vmatpush1.msra.mxu0 %v2569_v23  ;;  %1124 = vmatpush1.msra.mxu1 %v2571_v24  ;;  %v3670_v23 = vmov 0.0   ;;  %v3671_v24 = vld [vmem:[#allocation38_spill] sm:$0xff] }
 0x28b   :  { %1054 = vmatprep.subr.mxu0 %v2573_v25  ;;  %1125 = vmatprep.subr.mxu1 %v2575_v26  ;;  %v3020_v25 = vld [vmem:[#allocation9 + $0x1e8] sm:$0xff]  ;;  %v3023_v26 = vld [vmem:[#allocation9 + $0x1f8] sm:$0xff] }
 0x28c   :  { %1055 = vmatpush1.msra.mxu0 %v2581_v27  ;;  %1126 = vmatpush1.msra.mxu1 %v2583_v28  ;;  %3672 = vst [vmem:[#allocation19_spill] sm:$0xff] %v3020_v25  ;;  %3673 = vst [vmem:[#allocation20_spill] sm:$0xff] %v3023_v26  ;;  %v3674_v28 = vld [vmem:[#allocation43_spill] sm:$0xff] }
 0x28d   :  { %1056 = vmatprep.subr.mxu0 %v2589_v30  ;;  %1127 = vmatprep.subr.mxu1 %v2591_v31 }
 0x28e   :  { %1057 = vmatpush1.msra.mxu0 %v2595_v32  ;;  %1128 = vmatpush1.msra.mxu1 %v2597_v33 }
 0x28f   :  { %1058 = vmatprep.subr.mxu0 %v2599_v34  ;;  %1129 = vmatprep.subr.mxu1 %v2601_v35 }
 0x290   :  { %1059 = vmatpush1.msra.mxu0 %v2607_v36  ;;  %1130 = vmatpush1.msra.mxu1 %v2609_v37 }
 0x291   :  { %1060 = vmatprep.subr.mxu0 %v2615_v39  ;;  %1131 = vmatprep.subr.mxu1 %v2617_v40 }
 0x292   :  { %1061 = vmatpush1.msra.mxu0 %v2621_v41  ;;  %1132 = vmatpush1.msra.mxu1 %v2623_v42 }
 0x293   :  { %1062 = vmatprep.subr.mxu0 %v2625_v43  ;;  %1133 = vmatprep.subr.mxu1 %v2627_v44 }
 0x294   :  { %1063 = vmatpush1.msra.mxu0 %v2633_v45  ;;  %1134 = vmatpush1.msra.mxu1 %v2635_v46 }
 0x295   :  { %1064 = vmatprep.subr.mxu0 %v2641_v48  ;;  %1135 = vmatprep.subr.mxu1 %v2643_v49 }
 0x296   :  { %1065 = vmatpush1.msra.mxu0 %v2647_v50  ;;  %1136 = vmatpush1.msra.mxu1 %v2649_v51 }
 0x297   :  { %1066 = vmatprep.subr.mxu0 %v3627_v62  ;;  %1137 = vmatprep.subr.mxu1 %v3628_v4 }
 0x298   :  { %1067 = vmatpush1.msra.mxu0 %v3629_v29  ;;  %1138 = vmatpush1.msra.mxu1 %v3654_v5 }
 0x299   :  { %1068 = vmatprep.subr.mxu0 %v3655_v6  ;;  %1139 = vmatprep.subr.mxu1 %v3656_v7 }
 0x29a   :  { %1069 = vmatpush1.msra.mxu0 %v3657_v8  ;;  %1140 = vmatpush1.msra.mxu1 %v3658_v9 }
 0x29b   :  { %1070 = vmatprep.subr.mxu0 %v3659_v10  ;;  %1141 = vmatprep.subr.mxu1 %v3660_v12 }
 0x29c   :  { %1071 = vmatpush1.msra.mxu0 %v3661_v13  ;;  %1142 = vmatpush1.msra.mxu1 %v3662_v14 }
 0x29d   :  { %1072 = vmatprep.subr.mxu0 %v3663_v15  ;;  %1143 = vmatprep.subr.mxu1 %v3664_v16 }
 0x29e   :  { %1073 = vmatpush1.msra.mxu0 %v3665_v17  ;;  %1144 = vmatpush1.msra.mxu1 %v3666_v18 }
 0x29f   :  { %1074 = vmatprep.subr.mxu0 %v3667_v19  ;;  %1145 = vmatprep.subr.mxu1 %v3668_v21 }
 0x2a0   :  { %1075 = vmatpush1.msra.mxu0 %v3669_v22  ;;  %1108 = vmatprep.mubr.f32.mxu0 %v3670_v23 }
 0x2a1   :  { %1146 = vmatpush1.msra.mxu1 %v3671_v24  ;;  %1179 = vmatprep.mubr.f32.mxu1 %v3670_v23 }
 0x2a2   :  { %1221 = vmatprep.subr.mxu0 %v3020_v25  ;;  %1292 = vmatprep.subr.mxu1 %v3023_v26 }
 0x341   :  { %v933_v27 = vpop.f32.mrf.mxu0  ;;  %v1004_v61 = vpop.f32.mrf.mxu1 }
 0x342   :  { %v1009_v30 = vadd.f32 %v933_v27, %v3674_v28  ;;  %v1011_v57 = vadd.f32 %v1004_v61, %v3677_v56  ;;  %v3049_v56 = vld [vmem:[#allocation9 + $0x1d0] sm:$0xff] }
 0x343   :  { %v935_v31 = vpop.f32.mrf.mxu0  ;;  %v1006_v59 = vpop.f32.mrf.mxu1 }
 0x344   :  { %v2046_v1 = vmul.f32 -1.442695, %v1009_v30  ;;  %v1010_v52 = vadd.f32 %v935_v31, %v3675_v47  ;;  %v1012_v53 = vadd.f32 %v1006_v59, %v3676_v58  ;;  %v3037_v59 = vld [vmem:[#allocation9 + $0x1f0] sm:$0xff]  ;;  %v3040_v58 = vld [vmem:[#allocation9 + $0x1c8] sm:$0xff] }
 0x346   :  { %2161 = vpow2.f32 %v2046_v1  ;;  %v2047_v38 = vmul.f32 -1.442695, %v1010_v52  ;;  %v2048_v60 = vmul.f32 -1.442695, %v1012_v53  ;;  %v3046_v53 = vld [vmem:[#allocation9 + $0x1c0] sm:$0xff] }
 0x348   :  { %2163 = vpow2.f32 %v2047_v38  ;;  %v3034_v38 = vld [vmem:[#allocation9 + $0x1e0] sm:$0xff] }
 0x349   :  { %2165 = vtanh.f32 %v1011_v57  ;;  %v3052_v57 = vld [vmem:[#allocation9 + $0x1a8] sm:$0xff] }
 0x34a   :  { %2167 = vpow2.f32 %v2048_v60  ;;  %v3055_v60 = vld [vmem:[#allocation9 + $0x1b8] sm:$0xff] }
 0x353   :  { %v2162_v55 = vpop.eup %2161 }
 0x354   :  { %v1016_v0 = vadd.f32 1.0, %v2162_v55  ;;  %v3058_v55 = vld [vmem:[#allocation9 + $0x1a0] sm:$0xff] }
 0x355   :  { %v2164_v63 = vpop.eup %2163 }
 0x356   :  { %2169 = vrcp.f32 %v1016_v0  ;;  %v1022_v54 = vadd.f32 1.0, %v2164_v63  ;;  %v2166_v3 = vpop.eup %2165  ;;  %v3061_v0 = vld [vmem:[#allocation9 + $0x1b0] sm:$0xff]  ;;  %v3064_v63 = vld [vmem:[#allocation9 + $0x188] sm:$0xff] }
 0x357   :  { %v2168_v2 = vpop.eup %2167 }
 0x358   :  { %2171 = vrcp.f32 %v1022_v54  ;;  %v1029_v30 = vadd.f32 1.0, %v2168_v2  ;;  %v3067_v54 = vld [vmem:[#allocation9 + $0x198] sm:$0xff]  ;;  %v3073_v2 = vld [vmem:[#allocation9 + $0x190] sm:$0xff] }
 0x35a   :  { %2173 = vrcp.f32 %v1029_v30  ;;  %v3085_v30 = vld [vmem:[#allocation9 + $0x170] sm:$0xff] }
 0x35b   :  { %3679 = vst [vmem:[#allocation17_spill] sm:$0xff] %v3085_v30 }
 0x363   :  { %v2170_v20 = vpop.eup %2169 }
 0x364   :  { %v1033_v27 = vmul.f32 %v2170_v20, %v2166_v3  ;;  %v3070_v3 = vld [vmem:[#allocation9 + $0x180] sm:$0xff]  ;;  %v3076_v20 = vld [vmem:[#allocation9 + $0x168] sm:$0xff] }
 0x365   :  { %v2172_v28 = vpop.eup %2171 }
 0x366   :  { %v1032_v31 = vmul.f32 %v2172_v28, %v2953_v11  ;;  %v3043_v11 = vld [vmem:[#allocation9 + $0x1d8] sm:$0xff]  ;;  %v3082_v28 = vld [vmem:[#allocation9 + $0x160] sm:$0xff] }
 0x367   :  { %v2174_v47 = vpop.eup %2173  ;;  %3678 = vst [vmem:[#allocation21_spill] sm:$0xff] %v3082_v28 }
 0x368   :  { %v3031_v1 = vadd.f32 %v1033_v27, %v1032_v31  ;;  %v3079_v27 = vld [vmem:[#allocation9 + $0x178] sm:$0xff]  ;;  %v3088_v31 = vld [vmem:[#allocation9 + $0x148] sm:$0xff] }
 0x36a   :  { %2175 = vtanh.f32 %v3031_v1 }
 0x377   :  { %v2176_v52 = vpop.eup %2175 }
 0x378   :  { %v1036_v61 = vmul.f32 %v2176_v52, %v2174_v47  ;;  %v3091_v47 = vld [vmem:[#allocation9 + $0x158] sm:$0xff]  ;;  %v3094_v52 = vld [vmem:[#allocation9 + $0x140] sm:$0xff] }
 0x37a   :  { %1109 = vmatmul.mubr.f32.vlgmr.msra.gmra.mxu0 %v1036_v61  ;;  %1180 = vmatmul.mubr.f32.vlgmr.msra.gmra.mxu1 %v1036_v61  ;;  %v3097_v61 = vld [vmem:[#allocation9 + $0x150] sm:$0xff] }
 0x37b   :  { %1222 = vmatpush1.msra.mxu0 %v3034_v38  ;;  %1293 = vmatpush1.msra.mxu1 %v3037_v59 }
 0x37c   :  { %1223 = vmatprep.subr.mxu0 %v3040_v58  ;;  %1294 = vmatprep.subr.mxu1 %v3043_v11 }
 0x37d   :  { %1224 = vmatpush1.msra.mxu0 %v3046_v53  ;;  %1295 = vmatpush1.msra.mxu1 %v3049_v56 }
 0x37e   :  { %1225 = vmatprep.subr.mxu0 %v3052_v57  ;;  %1296 = vmatprep.subr.mxu1 %v3055_v60 }
 0x37f   :  { %1226 = vmatpush1.msra.mxu0 %v3058_v55  ;;  %1297 = vmatpush1.msra.mxu1 %v3061_v0 }
 0x380   :  { %1227 = vmatprep.subr.mxu0 %v3064_v63  ;;  %1298 = vmatprep.subr.mxu1 %v3067_v54 }
 0x381   :  { %1228 = vmatpush1.msra.mxu0 %v3070_v3  ;;  %1299 = vmatpush1.msra.mxu1 %v3073_v2 }
 0x382   :  { %1229 = vmatprep.subr.mxu0 %v3076_v20  ;;  %1300 = vmatprep.subr.mxu1 %v3079_v27 }
 0x383   :  { %1230 = vmatpush1.msra.mxu0 %v3082_v28  ;;  %1301 = vmatpush1.msra.mxu1 %v3085_v30  ;;  %v3100_v28 = vld [vmem:[#allocation9 + $0x128] sm:$0xff]  ;;  %v3103_v30 = vld [vmem:[#allocation9 + $0x138] sm:$0xff] }
 0x384   :  { %1231 = vmatprep.subr.mxu0 %v3088_v31  ;;  %1302 = vmatprep.subr.mxu1 %v3091_v47 }
 0x385   :  { %1232 = vmatpush1.msra.mxu0 %v3094_v52  ;;  %1303 = vmatpush1.msra.mxu1 %v3097_v61 }
 0x386   :  { %1233 = vmatprep.subr.mxu0 %v3100_v28  ;;  %1304 = vmatprep.subr.mxu1 %v3103_v30 }
 0x387   :  { %1234 = vmatpush1.msra.mxu0 %v2595_v32  ;;  %1305 = vmatpush1.msra.mxu1 %v2597_v33  ;;  %v3680_v33 = vld [vmem:[#allocation47_spill] sm:$0xff] }
 0x388   :  { %1235 = vmatprep.subr.mxu0 %v2599_v34  ;;  %1306 = vmatprep.subr.mxu1 %v2601_v35 }
 0x389   :  { %1236 = vmatpush1.msra.mxu0 %v2607_v36  ;;  %1307 = vmatpush1.msra.mxu1 %v2609_v37  ;;  %v3681_v37 = vld [vmem:[#allocation49_spill] sm:$0xff] }
 0x38a   :  { %1237 = vmatprep.subr.mxu0 %v2615_v39  ;;  %1308 = vmatprep.subr.mxu1 %v2617_v40 }
 0x38b   :  { %1238 = vmatpush1.msra.mxu0 %v2621_v41  ;;  %1309 = vmatpush1.msra.mxu1 %v2623_v42 }
 0x38c   :  { %1239 = vmatprep.subr.mxu0 %v2625_v43  ;;  %1310 = vmatprep.subr.mxu1 %v2627_v44  ;;  %v3682_v43 = vld [vmem:[#allocation50_spill] sm:$0xff] }
 0x38d   :  { %1240 = vmatpush1.msra.mxu0 %v2633_v45  ;;  %1311 = vmatpush1.msra.mxu1 %v2635_v46  ;;  %v3683_v45 = vld [vmem:[#allocation48_spill] sm:$0xff] }
 0x38e   :  { %1241 = vmatprep.subr.mxu0 %v2641_v48  ;;  %1312 = vmatprep.subr.mxu1 %v2643_v49 }
 0x38f   :  { %1242 = vmatpush1.msra.mxu0 %v2647_v50  ;;  %1313 = vmatpush1.msra.mxu1 %v2649_v51 }
 0x390   :  { %1243 = vmatprep.subr.mxu0 %v3627_v62  ;;  %1314 = vmatprep.subr.mxu1 %v3628_v4 }
 0x391   :  { %1244 = vmatpush1.msra.mxu0 %v3629_v29  ;;  %1315 = vmatpush1.msra.mxu1 %v3654_v5 }
 0x392   :  { %1245 = vmatprep.subr.mxu0 %v3655_v6  ;;  %1316 = vmatprep.subr.mxu1 %v3656_v7 }
 0x393   :  { %1246 = vmatpush1.msra.mxu0 %v3657_v8  ;;  %1317 = vmatpush1.msra.mxu1 %v3658_v9 }
 0x394   :  { %1247 = vmatprep.subr.mxu0 %v3659_v10  ;;  %1318 = vmatprep.subr.mxu1 %v3660_v12 }
 0x395   :  { %1248 = vmatpush1.msra.mxu0 %v3661_v13  ;;  %1319 = vmatpush1.msra.mxu1 %v3662_v14 }
 0x396   :  { %1249 = vmatprep.subr.mxu0 %v3663_v15  ;;  %1320 = vmatprep.subr.mxu1 %v3664_v16  ;;  %v3684_v15 = vld [vmem:[#allocation21_spill] sm:$0xff] }
 0x397   :  { %1250 = vmatpush1.msra.mxu0 %v3665_v17  ;;  %1321 = vmatpush1.msra.mxu1 %v3666_v18  ;;  %v3685_v16 = vld [vmem:[#allocation17_spill] sm:$0xff]  ;;  %v3180_v17 = vld [vmem:[#allocation9 + $0x120] sm:$0xff]  ;;  %v3183_v18 = vld [vmem:[#allocation9 + $0x130] sm:$0xff] }
 0x398   :  { %1251 = vmatprep.subr.mxu0 %v3667_v19  ;;  %1322 = vmatprep.subr.mxu1 %v3668_v21  ;;  %v3186_v19 = vld [vmem:[#allocation9 + $0x108] sm:$0xff]  ;;  %v3189_v21 = vld [vmem:[#allocation9 + $0x118] sm:$0xff] }
 0x399   :  { %1252 = vmatpush1.msra.mxu0 %v3669_v22  ;;  %1285 = vmatprep.mubr.f32.mxu0 %v3670_v23  ;;  %v3192_v22 = vld [vmem:[#allocation9 + $0x100] sm:$0xff] }
 0x39a   :  { %1323 = vmatpush1.msra.mxu1 %v3671_v24  ;;  %1356 = vmatprep.mubr.f32.mxu1 %v3670_v23  ;;  %v3195_v24 = vld [vmem:[#allocation9 + $0x110] sm:$0xff] }
 0x39b   :  { %1398 = vmatprep.subr.mxu0 %v3020_v25  ;;  %1469 = vmatprep.subr.mxu1 %v3023_v26 }
 0x43a   :  { %v1110_v32 = vpop.f32.mrf.mxu0  ;;  %v1181_v40 = vpop.f32.mrf.mxu1 }
 0x43b   :  { %v1186_v34 = vadd.f32 %v1110_v32, %v3680_v33  ;;  %v1188_v46 = vadd.f32 %v1181_v40, %v3683_v45  ;;  %v3201_v32 = vld [vmem:[#allocation9 + $0xf8] sm:$0xff]  ;;  %v3204_v33 = vld [vmem:[#allocation9 + $0xe0] sm:$0xff]  ;;  %v3222_v40 = vld [vmem:[#allocation9 + $0xa8] sm:$0xff] }
 0x43c   :  { %v1112_v35 = vpop.f32.mrf.mxu0  ;;  %v1183_v42 = vpop.f32.mrf.mxu1  ;;  %v3237_v45 = vld [vmem:[#allocation9 + $0x98] sm:$0xff] }
 0x43d   :  { %v2049_v36 = vmul.f32 -1.442695, %v1186_v34  ;;  %v1187_v39 = vadd.f32 %v1112_v35, %v3681_v37  ;;  %v1189_v44 = vadd.f32 %v1183_v42, %v3682_v43  ;;  %v3207_v34 = vld [vmem:[#allocation9 + $0xf0] sm:$0xff]  ;;  %v3210_v35 = vld [vmem:[#allocation9 + $0xc8] sm:$0xff]  ;;  %v3216_v37 = vld [vmem:[#allocation9 + $0xc0] sm:$0xff] }
 0x43e   :  { %v3228_v42 = vld [vmem:[#allocation9 + $0xa0] sm:$0xff]  ;;  %v3231_v43 = vld [vmem:[#allocation9 + $0xb0] sm:$0xff] }
 0x43f   :  { %2177 = vpow2.f32 %v2049_v36  ;;  %v2050_v41 = vmul.f32 -1.442695, %v1187_v39  ;;  %v2051_v48 = vmul.f32 -1.442695, %v1189_v44  ;;  %v3213_v36 = vld [vmem:[#allocation9 + $0xd8] sm:$0xff]  ;;  %v3219_v39 = vld [vmem:[#allocation9 + $0xd0] sm:$0xff] }
 0x440   :  { %v3234_v44 = vld [vmem:[#allocation9 + $0x88] sm:$0xff] }
 0x441   :  { %2179 = vpow2.f32 %v2050_v41  ;;  %v3225_v41 = vld [vmem:[#allocation9 + $0xb8] sm:$0xff] }
 0x442   :  { %2181 = vtanh.f32 %v1188_v46  ;;  %v3240_v46 = vld [vmem:[#allocation9 + $0x80] sm:$0xff] }
 0x443   :  { %2183 = vpow2.f32 %v2051_v48  ;;  %v3243_v48 = vld [vmem:[#allocation9 + $0x90] sm:$0xff] }
 0x444   :  { %3686 = vst [vmem:[#allocation18_spill] sm:$0xff] %v3243_v48 }
 0x44c   :  { %v2178_v49 = vpop.eup %2177 }
 0x44d   :  { %v1193_v50 = vadd.f32 1.0, %v2178_v49  ;;  %v3246_v49 = vld [vmem:[#allocation9 + $0x68] sm:$0xff] }
 0x44e   :  { %v2180_v51 = vpop.eup %2179  ;;  %3687 = vst [vmem:[#allocation39_spill] sm:$0xff] %v3246_v49 }
 0x44f   :  { %2185 = vrcp.f32 %v1193_v50  ;;  %v1199_v62 = vadd.f32 1.0, %v2180_v51  ;;  %v2182_v4 = vpop.eup %2181  ;;  %v3249_v50 = vld [vmem:[#allocation9 + $0x78] sm:$0xff]  ;;  %v3252_v51 = vld [vmem:[#allocation9 + $0x60] sm:$0xff] }
 0x450   :  { %v2184_v29 = vpop.eup %2183  ;;  %3688 = vst [vmem:[#allocation41_spill] sm:$0xff] %v3249_v50  ;;  %3689 = vst [vmem:[#allocation42_spill] sm:$0xff] %v3252_v51 }
 0x451   :  { %2187 = vrcp.f32 %v1199_v62  ;;  %v1206_v8 = vadd.f32 1.0, %v2184_v29  ;;  %v3255_v62 = vld [vmem:[#allocation9 + $0x70] sm:$0xff]  ;;  %v3261_v29 = vld [vmem:[#allocation9 + $0x58] sm:$0xff] }
 0x452   :  { %3690 = vst [vmem:[#allocation40_spill] sm:$0xff] %v3255_v62  ;;  %3692 = vst [vmem:[#allocation23_spill] sm:$0xff] %v3261_v29 }
 0x453   :  { %2189 = vrcp.f32 %v1206_v8  ;;  %v3273_v8 = vld [vmem:[#allocation9 + $0x38] sm:$0xff] }
 0x454   :  { %3696 = vst [vmem:[#allocation27_spill] sm:$0xff] %v3273_v8 }
 0x45c   :  { %v2186_v5 = vpop.eup %2185 }
 0x45d   :  { %v1210_v6 = vmul.f32 %v2186_v5, %v2182_v4  ;;  %v3258_v4 = vld [vmem:[#allocation9 + $0x48] sm:$0xff]  ;;  %v3264_v5 = vld [vmem:[#allocation9 + $0x40] sm:$0xff] }
 0x45e   :  { %v2188_v7 = vpop.eup %2187  ;;  %3691 = vst [vmem:[#allocation22_spill] sm:$0xff] %v3258_v4  ;;  %3693 = vst [vmem:[#allocation24_spill] sm:$0xff] %v3264_v5 }
 0x45f   :  { %v1209_v9 = vmul.f32 %v2188_v7, %v3031_v1  ;;  %v3198_v1 = vld [vmem:[#allocation9 + $0xe8] sm:$0xff] }
 0x460   :  { %v2190_v12 = vpop.eup %2189  ;;  %v3270_v7 = vld [vmem:[#allocation9 + $0x28] sm:$0xff] }
 0x461   :  { %v3153_v10 = vadd.f32 %v1210_v6, %v1209_v9  ;;  %v3267_v6 = vld [vmem:[#allocation9 + $0x50] sm:$0xff]  ;;  %3695 = vst [vmem:[#allocation26_spill] sm:$0xff] %v3270_v7  ;;  %v3276_v9 = vld [vmem:[#allocation9 + $0x20] sm:$0xff] }
 0x462   :  { %3694 = vst [vmem:[#allocation25_spill] sm:$0xff] %v3267_v6  ;;  %3697 = vst [vmem:[#allocation28_spill] sm:$0xff] %v3276_v9 }
 0x463   :  { %2191 = vtanh.f32 %v3153_v10 }
 0x470   :  { %v2192_v13 = vpop.eup %2191 }
 0x471   :  { %v1213_v14 = vmul.f32 %v2192_v13, %v2190_v12  ;;  %v3279_v12 = vld [vmem:[#allocation9 + $0x30] sm:$0xff]  ;;  %v3282_v13 = vld [vmem:[#allocation9 + $0x8] sm:$0xff] }
 0x472   :  { %3698 = vst [vmem:[#allocation29_spill] sm:$0xff] %v3279_v12  ;;  %3699 = vst [vmem:[#allocation30_spill] sm:$0xff] %v3282_v13 }
 0x473   :  { %1286 = vmatmul.mubr.f32.vlgmr.msra.gmra.mxu0 %v1213_v14  ;;  %1357 = vmatmul.mubr.f32.vlgmr.msra.gmra.mxu1 %v1213_v14  ;;  %v3285_v14 = vld [vmem:[#allocation9 + $0x18] sm:$0xff] }
 0x474   :  { %1399 = vmatpush1.msra.mxu0 %v3034_v38  ;;  %1470 = vmatpush1.msra.mxu1 %v3037_v59  ;;  %3700 = vst [vmem:[#allocation31_spill] sm:$0xff] %v3285_v14 }
 0x475   :  { %1400 = vmatprep.subr.mxu0 %v3040_v58  ;;  %1471 = vmatprep.subr.mxu1 %v3043_v11 }
 0x476   :  { %1401 = vmatpush1.msra.mxu0 %v3046_v53  ;;  %1472 = vmatpush1.msra.mxu1 %v3049_v56 }
 0x477   :  { %1402 = vmatprep.subr.mxu0 %v3052_v57  ;;  %1473 = vmatprep.subr.mxu1 %v3055_v60 }
 0x478   :  { %1403 = vmatpush1.msra.mxu0 %v3058_v55  ;;  %1474 = vmatpush1.msra.mxu1 %v3061_v0 }
 0x479   :  { %1404 = vmatprep.subr.mxu0 %v3064_v63  ;;  %1475 = vmatprep.subr.mxu1 %v3067_v54 }
 0x47a   :  { %1405 = vmatpush1.msra.mxu0 %v3070_v3  ;;  %1476 = vmatpush1.msra.mxu1 %v3073_v2 }
 0x47b   :  { %1406 = vmatprep.subr.mxu0 %v3076_v20  ;;  %1477 = vmatprep.subr.mxu1 %v3079_v27 }
 0x47c   :  { %1407 = vmatpush1.msra.mxu0 %v3684_v15  ;;  %1478 = vmatpush1.msra.mxu1 %v3685_v16 }
 0x47d   :  { %1408 = vmatprep.subr.mxu0 %v3088_v31  ;;  %1479 = vmatprep.subr.mxu1 %v3091_v47 }
 0x47e   :  { %1409 = vmatpush1.msra.mxu0 %v3094_v52  ;;  %1480 = vmatpush1.msra.mxu1 %v3097_v61 }
 0x47f   :  { %1410 = vmatprep.subr.mxu0 %v3100_v28  ;;  %1481 = vmatprep.subr.mxu1 %v3103_v30 }
 0x480   :  { %1411 = vmatpush1.msra.mxu0 %v3180_v17  ;;  %1482 = vmatpush1.msra.mxu1 %v3183_v18 }
 0x481   :  { %1412 = vmatprep.subr.mxu0 %v3186_v19  ;;  %1483 = vmatprep.subr.mxu1 %v3189_v21 }
 0x482   :  { %1413 = vmatpush1.msra.mxu0 %v3192_v22  ;;  %1484 = vmatpush1.msra.mxu1 %v3195_v24 }
 0x483   :  { %1414 = vmatprep.subr.mxu0 %v3198_v1  ;;  %1485 = vmatprep.subr.mxu1 %v3201_v32 }
 0x484   :  { %1415 = vmatpush1.msra.mxu0 %v3204_v33  ;;  %1486 = vmatpush1.msra.mxu1 %v3207_v34 }
 0x485   :  { %1416 = vmatprep.subr.mxu0 %v3210_v35  ;;  %1487 = vmatprep.subr.mxu1 %v3213_v36 }
 0x486   :  { %1417 = vmatpush1.msra.mxu0 %v3216_v37  ;;  %1488 = vmatpush1.msra.mxu1 %v3219_v39 }
 0x487   :  { %1418 = vmatprep.subr.mxu0 %v3222_v40  ;;  %1489 = vmatprep.subr.mxu1 %v3225_v41 }
 0x488   :  { %1419 = vmatpush1.msra.mxu0 %v3228_v42  ;;  %1490 = vmatpush1.msra.mxu1 %v3231_v43 }
 0x489   :  { %1420 = vmatprep.subr.mxu0 %v3234_v44  ;;  %1491 = vmatprep.subr.mxu1 %v3237_v45 }
 0x48a   :  { %1421 = vmatpush1.msra.mxu0 %v3240_v46  ;;  %1492 = vmatpush1.msra.mxu1 %v3243_v48 }
 0x48b   :  { %1422 = vmatprep.subr.mxu0 %v3246_v49  ;;  %1493 = vmatprep.subr.mxu1 %v3249_v50  ;;  %v3706_v50 = vld [vmem:[#allocation52_spill] sm:$0xff] }
 0x48c   :  { %1423 = vmatpush1.msra.mxu0 %v3252_v51  ;;  %1494 = vmatpush1.msra.mxu1 %v3255_v62  ;;  %v3705_v51 = vld [vmem:[#allocation54_spill] sm:$0xff] }
 0x48d   :  { %1424 = vmatprep.subr.mxu0 %v3258_v4  ;;  %1495 = vmatprep.subr.mxu1 %v3261_v29 }
 0x48e   :  { %1425 = vmatpush1.msra.mxu0 %v3264_v5  ;;  %1496 = vmatpush1.msra.mxu1 %v3267_v6  ;;  %v3704_v5 = vld [vmem:[#allocation53_spill] sm:$0xff] }
 0x48f   :  { %1426 = vmatprep.subr.mxu0 %v3270_v7  ;;  %1497 = vmatprep.subr.mxu1 %v3273_v8  ;;  %v3288_v7 = vld [vmem:[#allocation9] sm:$0xff]  ;;  %v3292_v8 = vld [vmem:[#allocation9 + $0x10] sm:$0xff] }
 0x490   :  { %1427 = vmatpush1.msra.mxu0 %v3276_v9  ;;  %1498 = vmatpush1.msra.mxu1 %v3279_v12  ;;  %3701 = vst [vmem:[#allocation32_spill] sm:$0xff] %v3288_v7  ;;  %3702 = vst [vmem:[#allocation33_spill] sm:$0xff] %v3292_v8  ;;  %v3703_v12 = vld [vmem:[#allocation51_spill] sm:$0xff] }
 0x491   :  { %1428 = vmatprep.subr.mxu0 %v3282_v13  ;;  %1499 = vmatprep.subr.mxu1 %v3285_v14 }
 0x492   :  { %1429 = vmatpush1.msra.mxu0 %v3288_v7  ;;  %1462 = vmatprep.mubr.f32.mxu0 %v3670_v23 }
 0x493   :  { %1500 = vmatpush1.msra.mxu1 %v3292_v8  ;;  %1533 = vmatprep.mubr.f32.mxu1 %v3670_v23 }
 0x494   :  { %1575 = vmatprep.subr.mxu0 %v3020_v25  ;;  %1646 = vmatprep.subr.mxu1 %v3023_v26 }
 0x533   :  { %v1287_v13 = vpop.f32.mrf.mxu0  ;;  %v1358_v7 = vpop.f32.mrf.mxu1 }
 0x534   :  { %v1363_v9 = vadd.f32 %v1287_v13, %v3703_v12  ;;  %v1365_v23 = vadd.f32 %v1358_v7, %v3706_v50  ;;  %v3712_v7 = vld [vmem:[#allocation22_spill] sm:$0xff] }
 0x535   :  { %v1289_v14 = vpop.f32.mrf.mxu0  ;;  %v1360_v62 = vpop.f32.mrf.mxu1 }
 0x536   :  { %v2052_v6 = vmul.f32 -1.442695, %v1363_v9  ;;  %v1364_v29 = vadd.f32 %v1289_v14, %v3704_v5  ;;  %v1366_v8 = vadd.f32 %v1360_v62, %v3705_v51  ;;  %v3711_v62 = vld [vmem:[#allocation40_spill] sm:$0xff] }
 0x538   :  { %2193 = vpow2.f32 %v2052_v6  ;;  %v2053_v4 = vmul.f32 -1.442695, %v1364_v29  ;;  %v2054_v49 = vmul.f32 -1.442695, %v1366_v8  ;;  %v3713_v8 = vld [vmem:[#allocation23_spill] sm:$0xff] }
 0x53a   :  { %2195 = vpow2.f32 %v2053_v4 }
 0x53b   :  { %2197 = vtanh.f32 %v1365_v23 }
 0x53c   :  { %2199 = vpow2.f32 %v2054_v49  ;;  %v3710_v49 = vld [vmem:[#allocation42_spill] sm:$0xff] }
 0x545   :  { %v2194_v25 = vpop.eup %2193 }
 0x546   :  { %v1370_v48 = vadd.f32 1.0, %v2194_v25 }
 0x547   :  { %v2196_v26 = vpop.eup %2195 }
 0x548   :  { %2201 = vrcp.f32 %v1370_v48  ;;  %v1376_v12 = vadd.f32 1.0, %v2196_v26  ;;  %v2198_v9 = vpop.eup %2197  ;;  %v3707_v26 = vld [vmem:[#allocation18_spill] sm:$0xff]  ;;  %v3709_v48 = vld [vmem:[#allocation41_spill] sm:$0xff] }
 0x549   :  { %v2200_v5 = vpop.eup %2199 }
 0x54a   :  { %2203 = vrcp.f32 %v1376_v12  ;;  %v1383_v4 = vadd.f32 1.0, %v2200_v5  ;;  %v3714_v12 = vld [vmem:[#allocation24_spill] sm:$0xff]  ;;  %v3716_v5 = vld [vmem:[#allocation26_spill] sm:$0xff] }
 0x54c   :  { %2205 = vrcp.f32 %v1383_v4  ;;  %v3720_v4 = vld [vmem:[#allocation30_spill] sm:$0xff] }
 0x555   :  { %v2202_v6 = vpop.eup %2201 }
 0x556   :  { %v1387_v13 = vmul.f32 %v2202_v6, %v2198_v9  ;;  %v3715_v9 = vld [vmem:[#allocation25_spill] sm:$0xff]  ;;  %v3717_v6 = vld [vmem:[#allocation27_spill] sm:$0xff] }
 0x557   :  { %v2204_v29 = vpop.eup %2203 }
 0x558   :  { %v1386_v14 = vmul.f32 %v2204_v29, %v3153_v10  ;;  %v3708_v10 = vld [vmem:[#allocation39_spill] sm:$0xff]  ;;  %v3719_v29 = vld [vmem:[#allocation29_spill] sm:$0xff] }
 0x559   :  { %v2206_v25 = vpop.eup %2205 }
 0x55a   :  { %v3303_v51 = vadd.f32 %v1387_v13, %v1386_v14  ;;  %v3718_v13 = vld [vmem:[#allocation28_spill] sm:$0xff]  ;;  %v3721_v14 = vld [vmem:[#allocation31_spill] sm:$0xff] }
 0x55c   :  { %2207 = vtanh.f32 %v3303_v51 }
 0x569   :  { %v2208_v23 = vpop.eup %2207 }
 0x56a   :  { %v1390_v50 = vmul.f32 %v2208_v23, %v2206_v25  ;;  %v3722_v25 = vld [vmem:[#allocation32_spill] sm:$0xff]  ;;  %v3723_v23 = vmov 0.0  }
 0x56c   :  { %1463 = vmatmul.mubr.f32.vlgmr.msra.gmra.mxu0 %v1390_v50  ;;  %1534 = vmatmul.mubr.f32.vlgmr.msra.gmra.mxu1 %v1390_v50  ;;  %v3724_v50 = vld [vmem:[#allocation33_spill] sm:$0xff] }
 0x56d   :  { %1576 = vmatpush1.msra.mxu0 %v3034_v38  ;;  %1647 = vmatpush1.msra.mxu1 %v3037_v59 }
 0x56e   :  { %1577 = vmatprep.subr.mxu0 %v3040_v58  ;;  %1648 = vmatprep.subr.mxu1 %v3043_v11 }
 0x56f   :  { %1578 = vmatpush1.msra.mxu0 %v3046_v53  ;;  %1649 = vmatpush1.msra.mxu1 %v3049_v56 }
 0x570   :  { %1579 = vmatprep.subr.mxu0 %v3052_v57  ;;  %1650 = vmatprep.subr.mxu1 %v3055_v60 }
 0x571   :  { %1580 = vmatpush1.msra.mxu0 %v3058_v55  ;;  %1651 = vmatpush1.msra.mxu1 %v3061_v0 }
 0x572   :  { %1581 = vmatprep.subr.mxu0 %v3064_v63  ;;  %1652 = vmatprep.subr.mxu1 %v3067_v54 }
 0x573   :  { %1582 = vmatpush1.msra.mxu0 %v3070_v3  ;;  %1653 = vmatpush1.msra.mxu1 %v3073_v2 }
 0x574   :  { %1583 = vmatprep.subr.mxu0 %v3076_v20  ;;  %1654 = vmatprep.subr.mxu1 %v3079_v27 }
 0x575   :  { %1584 = vmatpush1.msra.mxu0 %v3684_v15  ;;  %1655 = vmatpush1.msra.mxu1 %v3685_v16 }
 0x576   :  { %1585 = vmatprep.subr.mxu0 %v3088_v31  ;;  %1656 = vmatprep.subr.mxu1 %v3091_v47 }
 0x577   :  { %1586 = vmatpush1.msra.mxu0 %v3094_v52  ;;  %1657 = vmatpush1.msra.mxu1 %v3097_v61 }
 0x578   :  { %1587 = vmatprep.subr.mxu0 %v3100_v28  ;;  %1658 = vmatprep.subr.mxu1 %v3103_v30 }
 0x579   :  { %1588 = vmatpush1.msra.mxu0 %v3180_v17  ;;  %1659 = vmatpush1.msra.mxu1 %v3183_v18 }
 0x57a   :  { %1589 = vmatprep.subr.mxu0 %v3186_v19  ;;  %1660 = vmatprep.subr.mxu1 %v3189_v21 }
 0x57b   :  { %1590 = vmatpush1.msra.mxu0 %v3192_v22  ;;  %1661 = vmatpush1.msra.mxu1 %v3195_v24 }
 0x57c   :  { %1591 = vmatprep.subr.mxu0 %v3198_v1  ;;  %1662 = vmatprep.subr.mxu1 %v3201_v32 }
 0x57d   :  { %1592 = vmatpush1.msra.mxu0 %v3204_v33  ;;  %1663 = vmatpush1.msra.mxu1 %v3207_v34 }
 0x57e   :  { %1593 = vmatprep.subr.mxu0 %v3210_v35  ;;  %1664 = vmatprep.subr.mxu1 %v3213_v36 }
 0x57f   :  { %1594 = vmatpush1.msra.mxu0 %v3216_v37  ;;  %1665 = vmatpush1.msra.mxu1 %v3219_v39 }
 0x580   :  { %1595 = vmatprep.subr.mxu0 %v3222_v40  ;;  %1666 = vmatprep.subr.mxu1 %v3225_v41 }
 0x581   :  { %1596 = vmatpush1.msra.mxu0 %v3228_v42  ;;  %1667 = vmatpush1.msra.mxu1 %v3231_v43 }
 0x582   :  { %1597 = vmatprep.subr.mxu0 %v3234_v44  ;;  %1668 = vmatprep.subr.mxu1 %v3237_v45 }
 0x583   :  { %1598 = vmatpush1.msra.mxu0 %v3240_v46  ;;  %1669 = vmatpush1.msra.mxu1 %v3707_v26 }
 0x584   :  { %1599 = vmatprep.subr.mxu0 %v3708_v10  ;;  %1670 = vmatprep.subr.mxu1 %v3709_v48  ;;  %v3730_v48 = vld [vmem:[#allocation56_spill] sm:$0xff] }
 0x585   :  { %1600 = vmatpush1.msra.mxu0 %v3710_v49  ;;  %1671 = vmatpush1.msra.mxu1 %v3711_v62  ;;  %v3729_v49 = vld [vmem:[#allocation58_spill] sm:$0xff] }
 0x586   :  { %1601 = vmatprep.subr.mxu0 %v3712_v7  ;;  %1672 = vmatprep.subr.mxu1 %v3713_v8 }
 0x587   :  { %1602 = vmatpush1.msra.mxu0 %v3714_v12  ;;  %1673 = vmatpush1.msra.mxu1 %v3715_v9  ;;  %v3725_v9 = vld [vmem:[#allocation19_spill] sm:$0xff] }
 0x588   :  { %1603 = vmatprep.subr.mxu0 %v3716_v5  ;;  %1674 = vmatprep.subr.mxu1 %v3717_v6  ;;  %v3726_v5 = vld [vmem:[#allocation20_spill] sm:$0xff] }
 0x589   :  { %1604 = vmatpush1.msra.mxu0 %v3718_v13  ;;  %1675 = vmatpush1.msra.mxu1 %v3719_v29  ;;  %v3727_v13 = vld [vmem:[#allocation55_spill] sm:$0xff] }
 0x58a   :  { %1605 = vmatprep.subr.mxu0 %v3720_v4  ;;  %1676 = vmatprep.subr.mxu1 %v3721_v14  ;;  %v3728_v4 = vld [vmem:[#allocation57_spill] sm:$0xff] }
 0x58b   :  { %1606 = vmatpush1.msra.mxu0 %v3722_v25  ;;  %1639 = vmatprep.mubr.f32.mxu0 %v3723_v23 }
 0x58c   :  { %1677 = vmatpush1.msra.mxu1 %v3724_v50  ;;  %1710 = vmatprep.mubr.f32.mxu1 %v3723_v23 }
 0x58d   :  { %1752 = vmatprep.subr.mxu0 %v3725_v9  ;;  %1823 = vmatprep.subr.mxu1 %v3726_v5 }
 0x62c   :  { %v1464_v6 = vpop.f32.mrf.mxu0  ;;  %v1535_v14 = vpop.f32.mrf.mxu1 }
 0x62d   :  { %v1540_v12 = vadd.f32 %v1464_v6, %v3727_v13  ;;  %v1542_v23 = vadd.f32 %v1535_v14, %v3730_v48 }
 0x62e   :  { %v1466_v29 = vpop.f32.mrf.mxu0  ;;  %v1537_v62 = vpop.f32.mrf.mxu1 }
 0x62f   :  { %v2055_v8 = vmul.f32 -1.442695, %v1540_v12  ;;  %v1541_v7 = vadd.f32 %v1466_v29, %v3728_v4  ;;  %v1543_v50 = vadd.f32 %v1537_v62, %v3729_v49 }
 0x631   :  { %2209 = vpow2.f32 %v2055_v8  ;;  %v2056_v25 = vmul.f32 -1.442695, %v1541_v7  ;;  %v2057_v10 = vmul.f32 -1.442695, %v1543_v50  ;;  %v1936_v50 = vld [vmem:[#allocation11 + $0x70] sm:$0xff] }
 0x633   :  { %2211 = vpow2.f32 %v2056_v25 }
 0x634   :  { %2213 = vtanh.f32 %v1542_v23  ;;  %v1937_v23 = vld [vmem:[#allocation11 + $0x78] sm:$0xff] }
 0x635   :  { %2215 = vpow2.f32 %v2057_v10 }
 0x63e   :  { %v2210_v9 = vpop.eup %2209 }
 0x63f   :  { %v1547_v26 = vadd.f32 1.0, %v2210_v9  ;;  %v1935_v9 = vld [vmem:[#allocation11 + $0x68] sm:$0xff] }
 0x640   :  { %v2212_v5 = vpop.eup %2211 }
 0x641   :  { %2217 = vrcp.f32 %v1547_v26  ;;  %v1553_v6 = vadd.f32 1.0, %v2212_v5  ;;  %v2214_v12 = vpop.eup %2213  ;;  %v1934_v5 = vld [vmem:[#allocation11 + $0x60] sm:$0xff] }
 0x642   :  { %v2216_v13 = vpop.eup %2215 }
 0x643   :  { %2219 = vrcp.f32 %v1553_v6  ;;  %v1560_v4 = vadd.f32 1.0, %v2216_v13  ;;  %v1933_v6 = vld [vmem:[#allocation11 + $0x58] sm:$0xff]  ;;  %v1931_v13 = vld [vmem:[#allocation11 + $0x48] sm:$0xff] }
 0x645   :  { %2221 = vrcp.f32 %v1560_v4  ;;  %v1927_v4 = vld [vmem:[#allocation11 + $0x28] sm:$0xff] }
 0x64e   :  { %v2218_v8 = vpop.eup %2217 }
 0x64f   :  { %v1564_v29 = vmul.f32 %v2218_v8, %v2214_v12  ;;  %v1932_v12 = vld [vmem:[#allocation11 + $0x50] sm:$0xff]  ;;  %v1930_v8 = vld [vmem:[#allocation11 + $0x40] sm:$0xff] }
 0x650   :  { %v2220_v7 = vpop.eup %2219 }
 0x651   :  { %v1563_v25 = vmul.f32 %v2220_v7, %v3303_v51  ;;  %v1928_v7 = vld [vmem:[#allocation11 + $0x30] sm:$0xff] }
 0x652   :  { %v2222_v48 = vpop.eup %2221 }
 0x653   :  { %v3377_v49 = vadd.f32 %v1564_v29, %v1563_v25  ;;  %v1929_v29 = vld [vmem:[#allocation11 + $0x38] sm:$0xff]  ;;  %v1926_v25 = vld [vmem:[#allocation11 + $0x20] sm:$0xff] }
 0x655   :  { %2223 = vtanh.f32 %v3377_v49 }
 0x662   :  { %v2224_v62 = vpop.eup %2223 }
 0x663   :  { %v1567_v14 = vmul.f32 %v2224_v62, %v2222_v48  ;;  %v1924_v48 = vld [vmem:[#allocation11 + $0x10] sm:$0xff]  ;;  %v1923_v62 = vld [vmem:[#allocation11 + $0x8] sm:$0xff] }
 0x665   :  { %1640 = vmatmul.mubr.f32.vlgmr.msra.gmra.mxu0 %v1567_v14  ;;  %1711 = vmatmul.mubr.f32.vlgmr.msra.gmra.mxu1 %v1567_v14  ;;  %v1922_v14 = vld [vmem:[#allocation11] sm:$0xff] }
 0x666   :  { %1753 = vmatpush1.msra.mxu0 %v3034_v38  ;;  %1824 = vmatpush1.msra.mxu1 %v3037_v59  ;;  %v3731_v38 = vld [vmem:[#allocation18_spill] sm:$0xff]  ;;  %v3732_v59 = vld [vmem:[#allocation39_spill] sm:$0xff] }
 0x667   :  { %1754 = vmatprep.subr.mxu0 %v3040_v58  ;;  %1825 = vmatprep.subr.mxu1 %v3043_v11  ;;  %v3733_v58 = vld [vmem:[#allocation41_spill] sm:$0xff]  ;;  %v3734_v11 = vld [vmem:[#allocation42_spill] sm:$0xff] }
 0x668   :  { %1755 = vmatpush1.msra.mxu0 %v3046_v53  ;;  %1826 = vmatpush1.msra.mxu1 %v3049_v56  ;;  %v3735_v53 = vld [vmem:[#allocation40_spill] sm:$0xff]  ;;  %v3736_v56 = vld [vmem:[#allocation22_spill] sm:$0xff] }
 0x669   :  { %1756 = vmatprep.subr.mxu0 %v3052_v57  ;;  %1827 = vmatprep.subr.mxu1 %v3055_v60  ;;  %v3737_v57 = vld [vmem:[#allocation23_spill] sm:$0xff]  ;;  %v3738_v60 = vld [vmem:[#allocation24_spill] sm:$0xff] }
 0x66a   :  { %1757 = vmatpush1.msra.mxu0 %v3058_v55  ;;  %1828 = vmatpush1.msra.mxu1 %v3061_v0  ;;  %v3739_v55 = vld [vmem:[#allocation25_spill] sm:$0xff]  ;;  %v3740_v0 = vld [vmem:[#allocation26_spill] sm:$0xff] }
 0x66b   :  { %1758 = vmatprep.subr.mxu0 %v3064_v63  ;;  %1829 = vmatprep.subr.mxu1 %v3067_v54  ;;  %v3741_v63 = vld [vmem:[#allocation27_spill] sm:$0xff]  ;;  %v3742_v54 = vld [vmem:[#allocation28_spill] sm:$0xff] }
 0x66c   :  { %1759 = vmatpush1.msra.mxu0 %v3070_v3  ;;  %1830 = vmatpush1.msra.mxu1 %v3073_v2  ;;  %v3743_v3 = vld [vmem:[#allocation29_spill] sm:$0xff]  ;;  %v3744_v2 = vld [vmem:[#allocation30_spill] sm:$0xff] }
 0x66d   :  { %1760 = vmatprep.subr.mxu0 %v3076_v20  ;;  %1831 = vmatprep.subr.mxu1 %v3079_v27  ;;  %v3745_v20 = vld [vmem:[#allocation31_spill] sm:$0xff]  ;;  %v3746_v27 = vld [vmem:[#allocation32_spill] sm:$0xff] }
 0x66e   :  { %1761 = vmatpush1.msra.mxu0 %v3684_v15  ;;  %1832 = vmatpush1.msra.mxu1 %v3685_v16  ;;  %v3750_v16 = vld [vmem:[#allocation61_spill] sm:$0xff] }
 0x66f   :  { %1762 = vmatprep.subr.mxu0 %v3088_v31  ;;  %1833 = vmatprep.subr.mxu1 %v3091_v47  ;;  %v3749_v47 = vld [vmem:[#allocation59_spill] sm:$0xff] }
 0x670   :  { %1763 = vmatpush1.msra.mxu0 %v3094_v52  ;;  %1834 = vmatpush1.msra.mxu1 %v3097_v61 }
 0x671   :  { %1764 = vmatprep.subr.mxu0 %v3100_v28  ;;  %1835 = vmatprep.subr.mxu1 %v3103_v30  ;;  %v3747_v28 = vmov 0.0   ;;  %v3748_v30 = vld [vmem:[#allocation33_spill] sm:$0xff] }
 0x672   :  { %1765 = vmatpush1.msra.mxu0 %v3180_v17  ;;  %1836 = vmatpush1.msra.mxu1 %v3183_v18 }
 0x673   :  { %1766 = vmatprep.subr.mxu0 %v3186_v19  ;;  %1837 = vmatprep.subr.mxu1 %v3189_v21 }
 0x674   :  { %1767 = vmatpush1.msra.mxu0 %v3192_v22  ;;  %1838 = vmatpush1.msra.mxu1 %v3195_v24  ;;  %v3751_v22 = vld [vmem:[#allocation62_spill] sm:$0xff] }
 0x675   :  { %1768 = vmatprep.subr.mxu0 %v3198_v1  ;;  %1839 = vmatprep.subr.mxu1 %v3201_v32  ;;  %v3752_v1 = vld [vmem:[#allocation60_spill] sm:$0xff] }
 0x676   :  { %1769 = vmatpush1.msra.mxu0 %v3204_v33  ;;  %1840 = vmatpush1.msra.mxu1 %v3207_v34 }
 0x677   :  { %1770 = vmatprep.subr.mxu0 %v3210_v35  ;;  %1841 = vmatprep.subr.mxu1 %v3213_v36 }
 0x678   :  { %1771 = vmatpush1.msra.mxu0 %v3216_v37  ;;  %1842 = vmatpush1.msra.mxu1 %v3219_v39 }
 0x679   :  { %1772 = vmatprep.subr.mxu0 %v3222_v40  ;;  %1843 = vmatprep.subr.mxu1 %v3225_v41 }
 0x67a   :  { %1773 = vmatpush1.msra.mxu0 %v3228_v42  ;;  %1844 = vmatpush1.msra.mxu1 %v3231_v43 }
 0x67b   :  { %1774 = vmatprep.subr.mxu0 %v3234_v44  ;;  %1845 = vmatprep.subr.mxu1 %v3237_v45 }
 0x67c   :  { %1775 = vmatpush1.msra.mxu0 %v3240_v46  ;;  %1846 = vmatpush1.msra.mxu1 %v3731_v38 }
 0x67d   :  { %1776 = vmatprep.subr.mxu0 %v3732_v59  ;;  %1847 = vmatprep.subr.mxu1 %v3733_v58  ;;  %v3753_v59 = vld [vmem:[#allocation63_spill] sm:$0xff] }
 0x67e   :  { %1777 = vmatpush1.msra.mxu0 %v3734_v11  ;;  %1848 = vmatpush1.msra.mxu1 %v3735_v53 }
 0x67f   :  { %1778 = vmatprep.subr.mxu0 %v3736_v56  ;;  %1849 = vmatprep.subr.mxu1 %v3737_v57  ;;  %v3754_v56 = vld [vmem:[#allocation65_spill] sm:$0xff] }
 0x680   :  { %1779 = vmatpush1.msra.mxu0 %v3738_v60  ;;  %1850 = vmatpush1.msra.mxu1 %v3739_v55 }
 0x681   :  { %1780 = vmatprep.subr.mxu0 %v3740_v0  ;;  %1851 = vmatprep.subr.mxu1 %v3741_v63  ;;  %v3755_v63 = vld [vmem:[#allocation66_spill] sm:$0xff] }
 0x682   :  { %1781 = vmatpush1.msra.mxu0 %v3742_v54  ;;  %1852 = vmatpush1.msra.mxu1 %v3743_v3  ;;  %v3756_v3 = vld [vmem:[#allocation64_spill] sm:$0xff] }
 0x683   :  { %1782 = vmatprep.subr.mxu0 %v3744_v2  ;;  %1853 = vmatprep.subr.mxu1 %v3745_v20 }
 0x684   :  { %1783 = vmatpush1.msra.mxu0 %v3746_v27  ;;  %1816 = vmatprep.mubr.f32.mxu0 %v3747_v28 }
 0x685   :  { %1854 = vmatpush1.msra.mxu1 %v3748_v30  ;;  %1887 = vmatprep.mubr.f32.mxu1 %v3747_v28 }
 0x686   :  { %2082 = vmatprep.subr.mxu0 %v3747_v28 }
 0x725   :  { %v1641_v31 = vpop.f32.mrf.mxu0  ;;  %v1712_v18 = vpop.f32.mrf.mxu1 }
 0x726   :  { %v1717_v52 = vadd.f32 %v1641_v31, %v3749_v47  ;;  %v1719_v32 = vadd.f32 %v1712_v18, %v3752_v1  ;;  %v2064_v1 = vld [vmem:[%s3485_s5] ss:$0 sm:$0xff] }
 0x727   :  { %v1643_v61 = vpop.f32.mrf.mxu0  ;;  %v1714_v21 = vpop.f32.mrf.mxu1 }
 0x728   :  { %v2058_v15 = vmul.f32 -1.442695, %v1717_v52  ;;  %v1718_v17 = vadd.f32 %v1643_v61, %v3750_v16  ;;  %v1720_v24 = vadd.f32 %v1714_v21, %v3751_v22 }
 0x72a   :  { %2225 = vpow2.f32 %v2058_v15  ;;  %v2059_v19 = vmul.f32 -1.442695, %v1718_v17  ;;  %v2060_v33 = vmul.f32 -1.442695, %v1720_v24 }
 0x72c   :  { %2227 = vpow2.f32 %v2059_v19 }
 0x72d   :  { %2229 = vtanh.f32 %v1719_v32 }
 0x72e   :  { %2231 = vpow2.f32 %v2060_v33 }
 0x737   :  { %v2226_v34 = vpop.eup %2225 }
 0x738   :  { %v1724_v35 = vadd.f32 1.0, %v2226_v34 }
 0x739   :  { %v2228_v36 = vpop.eup %2227 }
 0x73a   :  { %2233 = vrcp.f32 %v1724_v35  ;;  %v1730_v37 = vadd.f32 1.0, %v2228_v36  ;;  %v2230_v39 = vpop.eup %2229 }
 0x73b   :  { %v2232_v40 = vpop.eup %2231 }
 0x73c   :  { %2235 = vrcp.f32 %v1730_v37  ;;  %v1737_v44 = vadd.f32 1.0, %v2232_v40 }
 0x73e   :  { %2237 = vrcp.f32 %v1737_v44 }
 0x747   :  { %v2234_v41 = vpop.eup %2233 }
 0x748   :  { %v1741_v42 = vmul.f32 %v2234_v41, %v2230_v39 }
 0x749   :  { %v2236_v43 = vpop.eup %2235 }
 0x74a   :  { %v1740_v45 = vmul.f32 %v2236_v43, %v3377_v49  ;;  %v1925_v49 = vld [vmem:[#allocation11 + $0x18] sm:$0xff] }
 0x74b   :  { %v2238_v51 = vpop.eup %2237 }
 0x74c   :  { %v3450_v46 = vadd.f32 %v1741_v42, %v1740_v45 }
 0x74e   :  { %2239 = vtanh.f32 %v3450_v46 }
 0x75b   :  { %v2240_v26 = vpop.eup %2239 }
 0x75c   :  { %v1744_v10 = vmul.f32 %v2240_v26, %v2238_v51 }
 0x75e   :  { %1817 = vmatmul.mubr.f32.vlgmr.msra.gmra.mxu0 %v1744_v10  ;;  %1888 = vmatmul.mubr.f32.vlgmr.msra.gmra.mxu1 %v1744_v10 }
 0x75f   :  { %2083 = vmatpush3.msra.mxu0 %v1937_v23  ;;  %2114 = vmatprep.mubr.msk.f32.mxu0 %vm2459_vm0, %v3747_v28 }
 0x760   :  { %2084 = vmatprep.subr.mxu0 %v3747_v28 }
 0x761   :  { %2085 = vmatpush3.msra.mxu0 %v1936_v50 }
 0x762   :  { %2086 = vmatprep.subr.mxu0 %v3747_v28 }
 0x763   :  { %2087 = vmatpush3.msra.mxu0 %v1935_v9 }
 0x764   :  { %2088 = vmatprep.subr.mxu0 %v3747_v28 }
 0x765   :  { %2089 = vmatpush3.msra.mxu0 %v1934_v5 }
 0x766   :  { %2090 = vmatprep.subr.mxu0 %v3747_v28 }
 0x767   :  { %2091 = vmatpush3.msra.mxu0 %v1933_v6 }
 0x768   :  { %2092 = vmatprep.subr.mxu0 %v3747_v28 }
 0x769   :  { %2093 = vmatpush3.msra.mxu0 %v1932_v12 }
 0x76a   :  { %2094 = vmatprep.subr.mxu0 %v3747_v28 }
 0x76b   :  { %2095 = vmatpush3.msra.mxu0 %v1931_v13 }
 0x76c   :  { %2096 = vmatprep.subr.mxu0 %v3747_v28 }
 0x76d   :  { %2097 = vmatpush3.msra.mxu0 %v1930_v8 }
 0x76e   :  { %2098 = vmatprep.subr.mxu0 %v3747_v28 }
 0x76f   :  { %2099 = vmatpush3.msra.mxu0 %v1929_v29 }
 0x770   :  { %2100 = vmatprep.subr.mxu0 %v3747_v28 }
 0x771   :  { %2101 = vmatpush3.msra.mxu0 %v1928_v7 }
 0x772   :  { %2102 = vmatprep.subr.mxu0 %v3747_v28 }
 0x773   :  { %2103 = vmatpush3.msra.mxu0 %v1927_v4 }
 0x774   :  { %2104 = vmatprep.subr.mxu0 %v3747_v28 }
 0x775   :  { %2105 = vmatpush3.msra.mxu0 %v1926_v25 }
 0x776   :  { %2106 = vmatprep.subr.mxu0 %v3747_v28 }
 0x777   :  { %2107 = vmatpush3.msra.mxu0 %v1925_v49 }
 0x778   :  { %2108 = vmatprep.subr.mxu0 %v3747_v28 }
 0x779   :  { %2109 = vmatpush3.msra.mxu0 %v1924_v48 }
 0x77a   :  { %2110 = vmatprep.subr.mxu0 %v3747_v28 }
 0x77b   :  { %2111 = vmatpush3.msra.mxu0 %v1923_v62 }
 0x77c   :  { %2112 = vmatprep.subr.mxu0 %v3747_v28 }
 0x77d   :  { %2113 = vmatpush3.msra.mxu0 %v1922_v14 }
 0x81e   :  { %v1818_v38 = vpop.f32.mrf.mxu0  ;;  %v1889_v60 = vpop.f32.mrf.mxu1 }
 0x81f   :  { %v1894_v58 = vadd.f32 %v1818_v38, %v3753_v59  ;;  %v1896_v2 = vadd.f32 %v1889_v60, %v3756_v3 }
 0x820   :  { %v1820_v11 = vpop.f32.mrf.mxu0  ;;  %v1891_v0 = vpop.f32.mrf.mxu1 }
 0x821   :  { %v2061_v53 = vmul.f32 -1.442695, %v1894_v58  ;;  %v1895_v57 = vadd.f32 %v1820_v11, %v3754_v56  ;;  %v1897_v54 = vadd.f32 %v1891_v0, %v3755_v63 }
 0x823   :  { %2241 = vpow2.f32 %v2061_v53  ;;  %v2062_v55 = vmul.f32 -1.442695, %v1895_v57  ;;  %v2063_v20 = vmul.f32 -1.442695, %v1897_v54 }
 0x825   :  { %2243 = vpow2.f32 %v2062_v55 }
 0x826   :  { %2245 = vtanh.f32 %v1896_v2 }
 0x827   :  { %2247 = vpow2.f32 %v2063_v20 }
 0x830   :  { %v2242_v27 = vpop.eup %2241 }
 0x831   :  { %v1901_v28 = vadd.f32 1.0, %v2242_v27 }
 0x832   :  { %v2244_v30 = vpop.eup %2243 }
 0x833   :  { %2249 = vrcp.f32 %v1901_v28  ;;  %v1907_v31 = vadd.f32 1.0, %v2244_v30  ;;  %v2246_v47 = vpop.eup %2245 }
 0x834   :  { %v2248_v52 = vpop.eup %2247 }
 0x835   :  { %2251 = vrcp.f32 %v1907_v31  ;;  %v1914_v17 = vadd.f32 1.0, %v2248_v52 }
 0x837   :  { %2253 = vrcp.f32 %v1914_v17 }
 0x840   :  { %v2250_v61 = vpop.eup %2249 }
 0x841   :  { %v1918_v15 = vmul.f32 %v2250_v61, %v2246_v47 }
 0x842   :  { %v2252_v16 = vpop.eup %2251 }
 0x843   :  { %v1917_v18 = vmul.f32 %v2252_v16, %v3450_v46 }
 0x844   :  { %v2254_v21 = vpop.eup %2253 }
 0x845   :  { %v1919_v19 = vadd.f32 %v1918_v15, %v1917_v18 }
 0x847   :  { %2255 = vtanh.f32 %v1919_v19 }
 0x854   :  { %v2256_v22 = vpop.eup %2255 }
 0x855   :  { %v1921_v24 = vmul.f32 %v2256_v22, %v2254_v21 }
 0x857   :  { %2115 = vmatmul.mubr.f32.vlgmr.msra.gmra.mxu0 %v1921_v24 }
 0x917   :  { %v2011_v32 = vpop.f32.mrf.mxu0 }
 0x918   :  { %v2012_v33 = vadd.f32 %v2064_v1, %v2011_v32 }
 0x919   :  { %v2116_v34 = vpop.f32.mrf.mxu0 }
 0x91a   :  { %2015 = vst [vmem:[#allocation12] sm:$0xff] %v2012_v33 }
 0x91b   :  { %2432 = shalt.err (!%p2429_p1)
}
 0x91c   :  { %2025 = dma.vmem_to_hbm [thread:$0]  %s2023_s24, 128, %s3486_s6, [#allocation5]  }
 0x91d   :  { %2447 = dma.done.wait [#allocation5], 128  }
 0x91e   :  { %2448 = vsyncadd [#allocation5], 4294967168 }
 0x91f   :  { %2029 = vsyncpa [#allocation4], 1 }
 0x920   :  { %2030 = vsyncpa [#allocation7], 1 }
 0x921   :  { %2031 = vsyncpa [#allocation10], 1 }
 0x922   :  { %2032 = vsyncpa [#allocation5], 1 }

</bundles_post_ra>
